<compile_context>
chip_gen: v5e
topology: v5e:2x2
jax: 0.10.0
libtpu: 0.0.40
codegen_flags: <defaults>
</compile_context>

<pallas_src>
import jax
import jax.numpy as jnp
from jax import lax
from jax.experimental import pallas as pl
from jax.experimental.pallas import tpu as pltpu


_VMEM_SPEC = pl.BlockSpec(memory_space=pltpu.MemorySpace.VMEM)


# --------------------------- per-layer GRU kernel ---------------------------
def gru_layer_kernel(len_ref, x_ref,
                     wif_ref, whf_ref, bif_ref, bhf_ref,
                     wib_ref, whb_ref, bib_ref, bhb_ref,
                     out_ref, hn_ref,
                     gxf_ref, gxb_ref, outf_ref, outb_ref):
    # len_ref: (N, 1) i32   x_ref: (T, N, Din)
    # w{i,h}{f,b}_ref: (Din|H, 3H)   b*_ref: (1, 3H)
    # out_ref: (T, N, 2H)   hn_ref: (2, N, H)
    # scratch: gx{f,b}_ref (T, N, 3H), out{f,b}_ref (T, N, H)
    T, N, Din = x_ref.shape
    H = whf_ref.shape[0]

    # One big MXU matmul per direction for all timesteps' input projections.
    x2 = x_ref[...].reshape(T * N, Din)
    gxf_ref[...] = (
        jnp.dot(x2, wif_ref[...], preferred_element_type=jnp.float32)
        + bif_ref[...]
    ).reshape(T, N, 3 * H)
    gxb_ref[...] = (
        jnp.dot(x2, wib_ref[...], preferred_element_type=jnp.float32)
        + bib_ref[...]
    ).reshape(T, N, 3 * H)

    len_col = len_ref[...]                                    # (N, 1) i32

    def gru_cell(gx, h, wh_ref, bh_ref):
        gh = jnp.dot(h, wh_ref[...], preferred_element_type=jnp.float32)
        gh = gh + bh_ref[...]                                 # (N, 3H)
        r = jax.nn.sigmoid(gx[:, 0:H] + gh[:, 0:H])
        z = jax.nn.sigmoid(gx[:, H:2 * H] + gh[:, H:2 * H])
        n = jnp.tanh(gx[:, 2 * H:3 * H] + r * gh[:, 2 * H:3 * H])
        return (1.0 - z) * n + z * h

    # Forward direction: t = 0 .. T-1, state frozen (packed) for t >= length.
    def fwd_body(t, h):
        h_new = gru_cell(gxf_ref[t], h, whf_ref, bhf_ref)
        mask = t < len_col                                    # (N, 1)
        h = jnp.where(mask, h_new, h)
        outf_ref[t] = jnp.where(mask, h_new, 0.0)
        return h

    h_fwd = lax.fori_loop(0, T, fwd_body, jnp.zeros((N, H), jnp.float32))
    hn_ref[0] = h_fwd

    # Backward direction: t = T-1 .. 0; state stays 0 until t = length-1.
    def bwd_body(s, h):
        t = T - 1 - s
        h_new = gru_cell(gxb_ref[t], h, whb_ref, bhb_ref)
        mask = t < len_col
        h = jnp.where(mask, h_new, h)
        outb_ref[t] = jnp.where(mask, h_new, 0.0)
        return h

    h_bwd = lax.fori_loop(0, T, bwd_body, jnp.zeros((N, H), jnp.float32))
    hn_ref[1] = h_bwd

    # Single lane-dense store of the concatenated bidirectional output.
    out_ref[...] = jnp.concatenate([outf_ref[...], outb_ref[...]], axis=-1)


def gru_bidir_layer(x_tm, len_col, layer_params):
    """x_tm: (T, N, Din) f32; len_col: (N, 1) i32 → ((T, N, 2H), (2, N, H))."""
    T, N, Din = x_tm.shape
    H = layer_params["whf"].shape[0]
    return pl.pallas_call(
        gru_layer_kernel,
        out_shape=(
            jax.ShapeDtypeStruct((T, N, 2 * H), jnp.float32),
            jax.ShapeDtypeStruct((2, N, H), jnp.float32),
        ),
        in_specs=[_VMEM_SPEC] * 10,
        out_specs=(_VMEM_SPEC, _VMEM_SPEC),
        scratch_shapes=[
            pltpu.VMEM((T, N, 3 * H), jnp.float32),
            pltpu.VMEM((T, N, 3 * H), jnp.float32),
            pltpu.VMEM((T, N, H), jnp.float32),
            pltpu.VMEM((T, N, H), jnp.float32),
        ],
    )(
        len_col, x_tm,
        layer_params["wif"], layer_params["whf"],
        layer_params["bif"], layer_params["bhf"],
        layer_params["wib"], layer_params["whb"],
        layer_params["bib"], layer_params["bhb"],
    )


# ------------------------------ Encoder forward ------------------------------
def encoder_forward(params, input_x, enc_len):
    """input_x: (N, T, D) f32, enc_len: (N,) i32.
    Returns (output (N, T, 2H), hidden (num_layers*2, N, H))."""
    N, T, _ = input_x.shape
    x_tm = jnp.transpose(input_x, (1, 0, 2))                  # time-major (T, N, D)
    len_col = enc_len.reshape(N, 1).astype(jnp.int32)

    hiddens = []
    h = x_tm
    for layer_params in params["layers"]:
        h, hn = gru_bidir_layer(h, len_col, layer_params)     # (T, N, 2H), (2, N, H)
        hiddens.append(hn)
    # TODO(synk): inter-layer dropout not implemented (module default dropout=0.0).

    output = jnp.transpose(h, (1, 0, 2))                      # (N, T, 2H)
    hidden = jnp.concatenate(hiddens, axis=0)                 # (2*num_layers, N, H)
    return output, hidden


def init_encoder_params(key, input_size, hidden_size, num_layers):
    layers = []
    din = input_size
    for _ in range(num_layers):
        keys = jax.random.split(key, 9)
        key = keys[0]
        layers.append({
            # weights stored pre-transposed: (Din, 3H) / (H, 3H) — no .T in kernel
            "wif": 0.1 * jax.random.normal(keys[1], (din, 3 * hidden_size), jnp.float32),
            "whf": 0.1 * jax.random.normal(keys[2], (hidden_size, 3 * hidden_size), jnp.float32),
            "bif": 0.1 * jax.random.normal(keys[3], (1, 3 * hidden_size), jnp.float32),
            "bhf": 0.1 * jax.random.normal(keys[4], (1, 3 * hidden_size), jnp.float32),
            "wib": 0.1 * jax.random.normal(keys[5], (din, 3 * hidden_size), jnp.float32),
            "whb": 0.1 * jax.random.normal(keys[6], (hidden_size, 3 * hidden_size), jnp.float32),
            "bib": 0.1 * jax.random.normal(keys[7], (1, 3 * hidden_size), jnp.float32),
            "bhb": 0.1 * jax.random.normal(keys[8], (1, 3 * hidden_size), jnp.float32),
        })
        din = 2 * hidden_size
    return {"layers": layers}


if __name__ == "__main__":
    N, T, D, H, L = 2, 16, 8, 32, 2

    key = jax.random.PRNGKey(0)
    k_params, k_x = jax.random.split(key)

    params = init_encoder_params(k_params, D, H, L)
    input_x = jax.random.normal(k_x, (N, T, D), dtype=jnp.float32)
    enc_len = jnp.array([T, 11], dtype=jnp.int32)             # sorted descending

    fwd = jax.jit(encoder_forward)
    output, hidden = fwd(params, input_x, enc_len)
    jax.block_until_ready(output)
    jax.block_until_ready(hidden)

    assert output.shape == (N, T, 2 * H)
    assert hidden.shape == (2 * L, N, H)
    assert bool(jnp.isfinite(output).all()) and bool(jnp.isfinite(hidden).all())
    # pad_packed_sequence semantics: padded positions are exactly zero.
    assert bool(jnp.all(output[1, int(enc_len[1]):, :] == 0.0))
    print("KERNEL_OK")
</pallas_src>

<mosaic_0001>
module attributes {stable_mosaic.version = 11 : i64} {
  func.func @gru_layer_kernel(%arg0: memref<2x1xi32, #tpu.memory_space<vmem>>, %arg1: memref<16x2x8xf32, #tpu.memory_space<vmem>>, %arg2: memref<8x96xf32, #tpu.memory_space<vmem>>, %arg3: memref<32x96xf32, #tpu.memory_space<vmem>>, %arg4: memref<1x96xf32, #tpu.memory_space<vmem>>, %arg5: memref<1x96xf32, #tpu.memory_space<vmem>>, %arg6: memref<8x96xf32, #tpu.memory_space<vmem>>, %arg7: memref<32x96xf32, #tpu.memory_space<vmem>>, %arg8: memref<1x96xf32, #tpu.memory_space<vmem>>, %arg9: memref<1x96xf32, #tpu.memory_space<vmem>>, %arg10: memref<16x2x64xf32, #tpu.memory_space<vmem>>, %arg11: memref<2x2x32xf32, #tpu.memory_space<vmem>>, %arg12: memref<16x2x96xf32, #tpu.memory_space<vmem>>, %arg13: memref<16x2x96xf32, #tpu.memory_space<vmem>>, %arg14: memref<16x2x32xf32, #tpu.memory_space<vmem>>, %arg15: memref<16x2x32xf32, #tpu.memory_space<vmem>>) attributes {dimension_semantics = [], scalar_prefetch = 0 : i64, scratch_operands = 4 : i64, tpu.core_type = #tpu.core_type<tc>} {
    %c0 = arith.constant 0 : index
    %c0_0 = arith.constant 0 : index
    %c0_1 = arith.constant 0 : index
    %0 = vector.load %arg1[%c0, %c0_0, %c0_1] : memref<16x2x8xf32, #tpu.memory_space<vmem>>, vector<16x2x8xf32>
    %1 = vector.shape_cast %0 : vector<16x2x8xf32> to vector<32x8xf32>
    %c0_2 = arith.constant 0 : index
    %c0_3 = arith.constant 0 : index
    %2 = vector.load %arg2[%c0_2, %c0_3] : memref<8x96xf32, #tpu.memory_space<vmem>>, vector<8x96xf32>
    %cst = arith.constant dense<0.000000e+00> : vector<32x96xf32>
    %3 = tpu.matmul %1, %2, %cst {dimension_numbers = #tpu.dot_dimension_numbers<[1], [0], [0], [1], [0, 0, 1, 1], [], []>} : vector<32x8xf32>, vector<8x96xf32>, vector<32x96xf32> -> vector<32x96xf32>
    %c0_4 = arith.constant 0 : index
    %c0_5 = arith.constant 0 : index
    %4 = vector.load %arg4[%c0_4, %c0_5] : memref<1x96xf32, #tpu.memory_space<vmem>>, vector<1x96xf32>
    %5 = vector.broadcast %4 : vector<1x96xf32> to vector<32x96xf32>
    %6 = arith.addf %3, %5 : vector<32x96xf32>
    %7 = vector.shape_cast %6 : vector<32x96xf32> to vector<16x2x96xf32>
    %c0_6 = arith.constant 0 : index
    %c0_7 = arith.constant 0 : index
    %c0_8 = arith.constant 0 : index
    %8 = vector.load %arg12[%c0_6, %c0_7, %c0_8] : memref<16x2x96xf32, #tpu.memory_space<vmem>>, vector<16x2x96xf32>
    tpu.vector_store %arg12[%c0_6, %c0_7, %c0_8], %7 {strides = array<i32>} : memref<16x2x96xf32, #tpu.memory_space<vmem>>, vector<16x2x96xf32>,
    %c0_9 = arith.constant 0 : index
    %c0_10 = arith.constant 0 : index
    %9 = vector.load %arg6[%c0_9, %c0_10] : memref<8x96xf32, #tpu.memory_space<vmem>>, vector<8x96xf32>
    %cst_11 = arith.constant dense<0.000000e+00> : vector<32x96xf32>
    %10 = tpu.matmul %1, %9, %cst_11 {dimension_numbers = #tpu.dot_dimension_numbers<[1], [0], [0], [1], [0, 0, 1, 1], [], []>} : vector<32x8xf32>, vector<8x96xf32>, vector<32x96xf32> -> vector<32x96xf32>
    %c0_12 = arith.constant 0 : index
    %c0_13 = arith.constant 0 : index
    %11 = vector.load %arg8[%c0_12, %c0_13] : memref<1x96xf32, #tpu.memory_space<vmem>>, vector<1x96xf32>
    %12 = vector.broadcast %11 : vector<1x96xf32> to vector<32x96xf32>
    %13 = arith.addf %10, %12 : vector<32x96xf32>
    %14 = vector.shape_cast %13 : vector<32x96xf32> to vector<16x2x96xf32>
    %c0_14 = arith.constant 0 : index
    %c0_15 = arith.constant 0 : index
    %c0_16 = arith.constant 0 : index
    %15 = vector.load %arg13[%c0_14, %c0_15, %c0_16] : memref<16x2x96xf32, #tpu.memory_space<vmem>>, vector<16x2x96xf32>
    tpu.vector_store %arg13[%c0_14, %c0_15, %c0_16], %14 {strides = array<i32>} : memref<16x2x96xf32, #tpu.memory_space<vmem>>, vector<16x2x96xf32>,
    %c0_17 = arith.constant 0 : index
    %c0_18 = arith.constant 0 : index
    %16 = vector.load %arg0[%c0_17, %c0_18] : memref<2x1xi32, #tpu.memory_space<vmem>>, vector<2x1xi32>
    %cst_19 = arith.constant 0.000000e+00 : f32
    %17 = vector.broadcast %cst_19 : f32 to vector<2x32xf32>
    %c0_i32 = arith.constant 0 : i32
    %c16_i32 = arith.constant 16 : i32
    %18 = arith.addi %c0_i32, %c16_i32 : i32
    %c1_i32 = arith.constant 1 : i32
    %19 = scf.for %arg16 = %c0_i32 to %18 step %c1_i32 iter_args(%arg17 = %17) -> (vector<2x32xf32>)  : i32 {
      %33 = arith.index_cast %arg16 : i32 to index
      %c0_40 = arith.constant 0 : index
      %c0_41 = arith.constant 0 : index
      %34 = vector.load %arg12[%33, %c0_40, %c0_41] : memref<16x2x96xf32, #tpu.memory_space<vmem>>, vector<1x2x96xf32>
      %35 = vector.shape_cast %34 : vector<1x2x96xf32> to vector<2x96xf32>
      %c0_42 = arith.constant 0 : index
      %c0_43 = arith.constant 0 : index
      %36 = vector.load %arg3[%c0_42, %c0_43] : memref<32x96xf32, #tpu.memory_space<vmem>>, vector<32x96xf32>
      %cst_44 = arith.constant dense<0.000000e+00> : vector<2x96xf32>
      %37 = tpu.matmul %arg17, %36, %cst_44 {dimension_numbers = #tpu.dot_dimension_numbers<[1], [0], [0], [1], [0, 0, 1, 1], [], []>} : vector<2x32xf32>, vector<32x96xf32>, vector<2x96xf32> -> vector<2x96xf32>
      %c0_45 = arith.constant 0 : index
      %c0_46 = arith.constant 0 : index
      %38 = vector.load %arg5[%c0_45, %c0_46] : memref<1x96xf32, #tpu.memory_space<vmem>>, vector<1x96xf32>
      %39 = vector.broadcast %38 : vector<1x96xf32> to vector<2x96xf32>
      %40 = arith.addf %37, %39 : vector<2x96xf32>
      %41 = vector.extract_strided_slice %35 {offsets = [0, 0], sizes = [2, 32], strides = [1, 1]} : vector<2x96xf32> to vector<2x32xf32>
      %42 = vector.extract_strided_slice %40 {offsets = [0, 0], sizes = [2, 32], strides = [1, 1]} : vector<2x96xf32> to vector<2x32xf32>
      %43 = arith.addf %41, %42 : vector<2x32xf32>
      %44 = arith.negf %43 : vector<2x32xf32>
      %45 = math.exp %44 : vector<2x32xf32>
      %cst_47 = arith.constant 1.000000e+00 : f32
      %46 = vector.broadcast %cst_47 : f32 to vector<2x32xf32>
      %47 = arith.addf %46, %45 : vector<2x32xf32>
      %48 = arith.divf %46, %47 : vector<2x32xf32>
      %49 = vector.extract_strided_slice %35 {offsets = [0, 32], sizes = [2, 32], strides = [1, 1]} : vector<2x96xf32> to vector<2x32xf32>
      %50 = vector.extract_strided_slice %40 {offsets = [0, 32], sizes = [2, 32], strides = [1, 1]} : vector<2x96xf32> to vector<2x32xf32>
      %51 = arith.addf %49, %50 : vector<2x32xf32>
      %52 = arith.negf %51 : vector<2x32xf32>
      %53 = math.exp %52 : vector<2x32xf32>
      %cst_48 = arith.constant 1.000000e+00 : f32
      %54 = vector.broadcast %cst_48 : f32 to vector<2x32xf32>
      %55 = arith.addf %54, %53 : vector<2x32xf32>
      %56 = arith.divf %54, %55 : vector<2x32xf32>
      %57 = vector.extract_strided_slice %35 {offsets = [0, 64], sizes = [2, 32], strides = [1, 1]} : vector<2x96xf32> to vector<2x32xf32>
      %58 = vector.extract_strided_slice %40 {offsets = [0, 64], sizes = [2, 32], strides = [1, 1]} : vector<2x96xf32> to vector<2x32xf32>
      %59 = arith.mulf %48, %58 : vector<2x32xf32>
      %60 = arith.addf %57, %59 : vector<2x32xf32>
      %61 = math.tanh %60 : vector<2x32xf32>
      %cst_49 = arith.constant 1.000000e+00 : f32
      %62 = vector.broadcast %cst_49 : f32 to vector<2x32xf32>
      %63 = arith.subf %62, %56 : vector<2x32xf32>
      %64 = arith.mulf %63, %61 : vector<2x32xf32>
      %65 = arith.mulf %56, %arg17 : vector<2x32xf32>
      %66 = arith.addf %64, %65 : vector<2x32xf32>
      %67 = vector.broadcast %arg16 : i32 to vector<2x1xi32>
      %68 = arith.cmpi slt, %67, %16 : vector<2x1xi32>
      %69 = vector.shape_cast %68 : vector<2x1xi1> to vector<2x1xi1>
      %70 = vector.broadcast %69 : vector<2x1xi1> to vector<2x32xi1>
      %71 = arith.select %70, %66, %arg17 : vector<2x32xi1>, vector<2x32xf32>
      %cst_50 = arith.constant 0.000000e+00 : f32
      %72 = vector.shape_cast %68 : vector<2x1xi1> to vector<2x1xi1>
      %73 = vector.broadcast %72 : vector<2x1xi1> to vector<2x32xi1>
      %74 = vector.broadcast %cst_50 : f32 to vector<2x32xf32>
      %75 = arith.select %73, %66, %74 : vector<2x32xi1>, vector<2x32xf32>
      %76 = arith.index_cast %arg16 : i32 to index
      %c0_51 = arith.constant 0 : index
      %c0_52 = arith.constant 0 : index
      %77 = vector.load %arg14[%76, %c0_51, %c0_52] : memref<16x2x32xf32, #tpu.memory_space<vmem>>, vector<1x2x32xf32>
      %78 = vector.shape_cast %77 : vector<1x2x32xf32> to vector<2x32xf32>
      %79 = vector.shape_cast %75 : vector<2x32xf32> to vector<1x2x32xf32>
      tpu.vector_store %arg14[%76, %c0_51, %c0_52], %79 {strides = array<i32>} : memref<16x2x32xf32, #tpu.memory_space<vmem>>, vector<1x2x32xf32>,
      scf.yield %71 : vector<2x32xf32>
    }
    %c16_i32_20 = arith.constant 16 : i32
    %c0_21 = arith.constant 0 : index
    %c0_22 = arith.constant 0 : index
    %c0_23 = arith.constant 0 : index
    %20 = vector.load %arg11[%c0_21, %c0_22, %c0_23] : memref<2x2x32xf32, #tpu.memory_space<vmem>>, vector<1x2x32xf32>
    %21 = vector.shape_cast %20 : vector<1x2x32xf32> to vector<2x32xf32>
    %22 = vector.shape_cast %19 : vector<2x32xf32> to vector<1x2x32xf32>
    tpu.vector_store %arg11[%c0_21, %c0_22, %c0_23], %22 {strides = array<i32>} : memref<2x2x32xf32, #tpu.memory_space<vmem>>, vector<1x2x32xf32>,
    %cst_24 = arith.constant 0.000000e+00 : f32
    %23 = vector.broadcast %cst_24 : f32 to vector<2x32xf32>
    %c0_i32_25 = arith.constant 0 : i32
    %c16_i32_26 = arith.constant 16 : i32
    %24 = arith.addi %c0_i32_25, %c16_i32_26 : i32
    %c1_i32_27 = arith.constant 1 : i32
    %25 = scf.for %arg16 = %c0_i32_25 to %24 step %c1_i32_27 iter_args(%arg17 = %23) -> (vector<2x32xf32>)  : i32 {
      %c15_i32 = arith.constant 15 : i32
      %33 = arith.subi %c15_i32, %arg16 : i32
      %34 = arith.index_cast %33 : i32 to index
      %c0_40 = arith.constant 0 : index
      %c0_41 = arith.constant 0 : index
      %35 = vector.load %arg13[%34, %c0_40, %c0_41] : memref<16x2x96xf32, #tpu.memory_space<vmem>>, vector<1x2x96xf32>
      %36 = vector.shape_cast %35 : vector<1x2x96xf32> to vector<2x96xf32>
      %c0_42 = arith.constant 0 : index
      %c0_43 = arith.constant 0 : index
      %37 = vector.load %arg7[%c0_42, %c0_43] : memref<32x96xf32, #tpu.memory_space<vmem>>, vector<32x96xf32>
      %cst_44 = arith.constant dense<0.000000e+00> : vector<2x96xf32>
      %38 = tpu.matmul %arg17, %37, %cst_44 {dimension_numbers = #tpu.dot_dimension_numbers<[1], [0], [0], [1], [0, 0, 1, 1], [], []>} : vector<2x32xf32>, vector<32x96xf32>, vector<2x96xf32> -> vector<2x96xf32>
      %c0_45 = arith.constant 0 : index
      %c0_46 = arith.constant 0 : index
      %39 = vector.load %arg9[%c0_45, %c0_46] : memref<1x96xf32, #tpu.memory_space<vmem>>, vector<1x96xf32>
      %40 = vector.broadcast %39 : vector<1x96xf32> to vector<2x96xf32>
      %41 = arith.addf %38, %40 : vector<2x96xf32>
      %42 = vector.extract_strided_slice %36 {offsets = [0, 0], sizes = [2, 32], strides = [1, 1]} : vector<2x96xf32> to vector<2x32xf32>
      %43 = vector.extract_strided_slice %41 {offsets = [0, 0], sizes = [2, 32], strides = [1, 1]} : vector<2x96xf32> to vector<2x32xf32>
      %44 = arith.addf %42, %43 : vector<2x32xf32>
      %45 = arith.negf %44 : vector<2x32xf32>
      %46 = math.exp %45 : vector<2x32xf32>
      %cst_47 = arith.constant 1.000000e+00 : f32
      %47 = vector.broadcast %cst_47 : f32 to vector<2x32xf32>
      %48 = arith.addf %47, %46 : vector<2x32xf32>
      %49 = arith.divf %47, %48 : vector<2x32xf32>
      %50 = vector.extract_strided_slice %36 {offsets = [0, 32], sizes = [2, 32], strides = [1, 1]} : vector<2x96xf32> to vector<2x32xf32>
      %51 = vector.extract_strided_slice %41 {offsets = [0, 32], sizes = [2, 32], strides = [1, 1]} : vector<2x96xf32> to vector<2x32xf32>
      %52 = arith.addf %50, %51 : vector<2x32xf32>
      %53 = arith.negf %52 : vector<2x32xf32>
      %54 = math.exp %53 : vector<2x32xf32>
      %cst_48 = arith.constant 1.000000e+00 : f32
      %55 = vector.broadcast %cst_48 : f32 to vector<2x32xf32>
      %56 = arith.addf %55, %54 : vector<2x32xf32>
      %57 = arith.divf %55, %56 : vector<2x32xf32>
      %58 = vector.extract_strided_slice %36 {offsets = [0, 64], sizes = [2, 32], strides = [1, 1]} : vector<2x96xf32> to vector<2x32xf32>
      %59 = vector.extract_strided_slice %41 {offsets = [0, 64], sizes = [2, 32], strides = [1, 1]} : vector<2x96xf32> to vector<2x32xf32>
      %60 = arith.mulf %49, %59 : vector<2x32xf32>
      %61 = arith.addf %58, %60 : vector<2x32xf32>
      %62 = math.tanh %61 : vector<2x32xf32>
      %cst_49 = arith.constant 1.000000e+00 : f32
      %63 = vector.broadcast %cst_49 : f32 to vector<2x32xf32>
      %64 = arith.subf %63, %57 : vector<2x32xf32>
      %65 = arith.mulf %64, %62 : vector<2x32xf32>
      %66 = arith.mulf %57, %arg17 : vector<2x32xf32>
      %67 = arith.addf %65, %66 : vector<2x32xf32>
      %68 = vector.broadcast %33 : i32 to vector<2x1xi32>
      %69 = arith.cmpi slt, %68, %16 : vector<2x1xi32>
      %70 = vector.shape_cast %69 : vector<2x1xi1> to vector<2x1xi1>
      %71 = vector.broadcast %70 : vector<2x1xi1> to vector<2x32xi1>
      %72 = arith.select %71, %67, %arg17 : vector<2x32xi1>, vector<2x32xf32>
      %cst_50 = arith.constant 0.000000e+00 : f32
      %73 = vector.shape_cast %69 : vector<2x1xi1> to vector<2x1xi1>
      %74 = vector.broadcast %73 : vector<2x1xi1> to vector<2x32xi1>
      %75 = vector.broadcast %cst_50 : f32 to vector<2x32xf32>
      %76 = arith.select %74, %67, %75 : vector<2x32xi1>, vector<2x32xf32>
      %77 = arith.index_cast %33 : i32 to index
      %c0_51 = arith.constant 0 : index
      %c0_52 = arith.constant 0 : index
      %78 = vector.load %arg15[%77, %c0_51, %c0_52] : memref<16x2x32xf32, #tpu.memory_space<vmem>>, vector<1x2x32xf32>
      %79 = vector.shape_cast %78 : vector<1x2x32xf32> to vector<2x32xf32>
      %80 = vector.shape_cast %76 : vector<2x32xf32> to vector<1x2x32xf32>
      tpu.vector_store %arg15[%77, %c0_51, %c0_52], %80 {strides = array<i32>} : memref<16x2x32xf32, #tpu.memory_space<vmem>>, vector<1x2x32xf32>,
      scf.yield %72 : vector<2x32xf32>
    }
    %c16_i32_28 = arith.constant 16 : i32
    %c1 = arith.constant 1 : index
    %c0_29 = arith.constant 0 : index
    %c0_30 = arith.constant 0 : index
    %26 = vector.load %arg11[%c1, %c0_29, %c0_30] : memref<2x2x32xf32, #tpu.memory_space<vmem>>, vector<1x2x32xf32>
    %27 = vector.shape_cast %26 : vector<1x2x32xf32> to vector<2x32xf32>
    %28 = vector.shape_cast %25 : vector<2x32xf32> to vector<1x2x32xf32>
    tpu.vector_store %arg11[%c1, %c0_29, %c0_30], %28 {strides = array<i32>} : memref<2x2x32xf32, #tpu.memory_space<vmem>>, vector<1x2x32xf32>,
    %c0_31 = arith.constant 0 : index
    %c0_32 = arith.constant 0 : index
    %c0_33 = arith.constant 0 : index
    %29 = vector.load %arg14[%c0_31, %c0_32, %c0_33] : memref<16x2x32xf32, #tpu.memory_space<vmem>>, vector<16x2x32xf32>
    %c0_34 = arith.constant 0 : index
    %c0_35 = arith.constant 0 : index
    %c0_36 = arith.constant 0 : index
    %30 = vector.load %arg15[%c0_34, %c0_35, %c0_36] : memref<16x2x32xf32, #tpu.memory_space<vmem>>, vector<16x2x32xf32>
    %31 = tpu.concatenate %29, %30 in 2 : vector<16x2x32xf32>, vector<16x2x32xf32> -> vector<16x2x64xf32>
    %c0_37 = arith.constant 0 : index
    %c0_38 = arith.constant 0 : index
    %c0_39 = arith.constant 0 : index
    %32 = vector.load %arg10[%c0_37, %c0_38, %c0_39] : memref<16x2x64xf32, #tpu.memory_space<vmem>>, vector<16x2x64xf32>
    tpu.vector_store %arg10[%c0_37, %c0_38, %c0_39], %31 {strides = array<i32>} : memref<16x2x64xf32, #tpu.memory_space<vmem>>, vector<16x2x64xf32>,
    return
  }
}

module attributes {stable_mosaic.version = 11 : i64} {
  func.func @gru_layer_kernel(%arg0: memref<2x1xi32, #tpu.memory_space<vmem>>, %arg1: memref<16x2x64xf32, #tpu.memory_space<vmem>>, %arg2: memref<64x96xf32, #tpu.memory_space<vmem>>, %arg3: memref<32x96xf32, #tpu.memory_space<vmem>>, %arg4: memref<1x96xf32, #tpu.memory_space<vmem>>, %arg5: memref<1x96xf32, #tpu.memory_space<vmem>>, %arg6: memref<64x96xf32, #tpu.memory_space<vmem>>, %arg7: memref<32x96xf32, #tpu.memory_space<vmem>>, %arg8: memref<1x96xf32, #tpu.memory_space<vmem>>, %arg9: memref<1x96xf32, #tpu.memory_space<vmem>>, %arg10: memref<16x2x64xf32, #tpu.memory_space<vmem>>, %arg11: memref<2x2x32xf32, #tpu.memory_space<vmem>>, %arg12: memref<16x2x96xf32, #tpu.memory_space<vmem>>, %arg13: memref<16x2x96xf32, #tpu.memory_space<vmem>>, %arg14: memref<16x2x32xf32, #tpu.memory_space<vmem>>, %arg15: memref<16x2x32xf32, #tpu.memory_space<vmem>>) attributes {dimension_semantics = [], scalar_prefetch = 0 : i64, scratch_operands = 4 : i64, tpu.core_type = #tpu.core_type<tc>} {
    %c0 = arith.constant 0 : index
    %c0_0 = arith.constant 0 : index
    %c0_1 = arith.constant 0 : index
    %0 = vector.load %arg1[%c0, %c0_0, %c0_1] : memref<16x2x64xf32, #tpu.memory_space<vmem>>, vector<16x2x64xf32>
    %1 = vector.shape_cast %0 : vector<16x2x64xf32> to vector<32x64xf32>
    %c0_2 = arith.constant 0 : index
    %c0_3 = arith.constant 0 : index
    %2 = vector.load %arg2[%c0_2, %c0_3] : memref<64x96xf32, #tpu.memory_space<vmem>>, vector<64x96xf32>
    %cst = arith.constant dense<0.000000e+00> : vector<32x96xf32>
    %3 = tpu.matmul %1, %2, %cst {dimension_numbers = #tpu.dot_dimension_numbers<[1], [0], [0], [1], [0, 0, 1, 1], [], []>} : vector<32x64xf32>, vector<64x96xf32>, vector<32x96xf32> -> vector<32x96xf32>
    %c0_4 = arith.constant 0 : index
    %c0_5 = arith.constant 0 : index
    %4 = vector.load %arg4[%c0_4, %c0_5] : memref<1x96xf32, #tpu.memory_space<vmem>>, vector<1x96xf32>
    %5 = vector.broadcast %4 : vector<1x96xf32> to vector<32x96xf32>
    %6 = arith.addf %3, %5 : vector<32x96xf32>
    %7 = vector.shape_cast %6 : vector<32x96xf32> to vector<16x2x96xf32>
    %c0_6 = arith.constant 0 : index
    %c0_7 = arith.constant 0 : index
    %c0_8 = arith.constant 0 : index
    %8 = vector.load %arg12[%c0_6, %c0_7, %c0_8] : memref<16x2x96xf32, #tpu.memory_space<vmem>>, vector<16x2x96xf32>
    tpu.vector_store %arg12[%c0_6, %c0_7, %c0_8], %7 {strides = array<i32>} : memref<16x2x96xf32, #tpu.memory_space<vmem>>, vector<16x2x96xf32>,
    %c0_9 = arith.constant 0 : index
    %c0_10 = arith.constant 0 : index
    %9 = vector.load %arg6[%c0_9, %c0_10] : memref<64x96xf32, #tpu.memory_space<vmem>>, vector<64x96xf32>
    %cst_11 = arith.constant dense<0.000000e+00> : vector<32x96xf32>
    %10 = tpu.matmul %1, %9, %cst_11 {dimension_numbers = #tpu.dot_dimension_numbers<[1], [0], [0], [1], [0, 0, 1, 1], [], []>} : vector<32x64xf32>, vector<64x96xf32>, vector<32x96xf32> -> vector<32x96xf32>
    %c0_12 = arith.constant 0 : index
    %c0_13 = arith.constant 0 : index
    %11 = vector.load %arg8[%c0_12, %c0_13] : memref<1x96xf32, #tpu.memory_space<vmem>>, vector<1x96xf32>
    %12 = vector.broadcast %11 : vector<1x96xf32> to vector<32x96xf32>
    %13 = arith.addf %10, %12 : vector<32x96xf32>
    %14 = vector.shape_cast %13 : vector<32x96xf32> to vector<16x2x96xf32>
    %c0_14 = arith.constant 0 : index
    %c0_15 = arith.constant 0 : index
    %c0_16 = arith.constant 0 : index
    %15 = vector.load %arg13[%c0_14, %c0_15, %c0_16] : memref<16x2x96xf32, #tpu.memory_space<vmem>>, vector<16x2x96xf32>
    tpu.vector_store %arg13[%c0_14, %c0_15, %c0_16], %14 {strides = array<i32>} : memref<16x2x96xf32, #tpu.memory_space<vmem>>, vector<16x2x96xf32>,
    %c0_17 = arith.constant 0 : index
    %c0_18 = arith.constant 0 : index
    %16 = vector.load %arg0[%c0_17, %c0_18] : memref<2x1xi32, #tpu.memory_space<vmem>>, vector<2x1xi32>
    %cst_19 = arith.constant 0.000000e+00 : f32
    %17 = vector.broadcast %cst_19 : f32 to vector<2x32xf32>
    %c0_i32 = arith.constant 0 : i32
    %c16_i32 = arith.constant 16 : i32
    %18 = arith.addi %c0_i32, %c16_i32 : i32
    %c1_i32 = arith.constant 1 : i32
    %19 = scf.for %arg16 = %c0_i32 to %18 step %c1_i32 iter_args(%arg17 = %17) -> (vector<2x32xf32>)  : i32 {
      %33 = arith.index_cast %arg16 : i32 to index
      %c0_40 = arith.constant 0 : index
      %c0_41 = arith.constant 0 : index
      %34 = vector.load %arg12[%33, %c0_40, %c0_41] : memref<16x2x96xf32, #tpu.memory_space<vmem>>, vector<1x2x96xf32>
      %35 = vector.shape_cast %34 : vector<1x2x96xf32> to vector<2x96xf32>
      %c0_42 = arith.constant 0 : index
      %c0_43 = arith.constant 0 : index
      %36 = vector.load %arg3[%c0_42, %c0_43] : memref<32x96xf32, #tpu.memory_space<vmem>>, vector<32x96xf32>
      %cst_44 = arith.constant dense<0.000000e+00> : vector<2x96xf32>
      %37 = tpu.matmul %arg17, %36, %cst_44 {dimension_numbers = #tpu.dot_dimension_numbers<[1], [0], [0], [1], [0, 0, 1, 1], [], []>} : vector<2x32xf32>, vector<32x96xf32>, vector<2x96xf32> -> vector<2x96xf32>
      %c0_45 = arith.constant 0 : index
      %c0_46 = arith.constant 0 : index
      %38 = vector.load %arg5[%c0_45, %c0_46] : memref<1x96xf32, #tpu.memory_space<vmem>>, vector<1x96xf32>
      %39 = vector.broadcast %38 : vector<1x96xf32> to vector<2x96xf32>
      %40 = arith.addf %37, %39 : vector<2x96xf32>
      %41 = vector.extract_strided_slice %35 {offsets = [0, 0], sizes = [2, 32], strides = [1, 1]} : vector<2x96xf32> to vector<2x32xf32>
      %42 = vector.extract_strided_slice %40 {offsets = [0, 0], sizes = [2, 32], strides = [1, 1]} : vector<2x96xf32> to vector<2x32xf32>
      %43 = arith.addf %41, %42 : vector<2x32xf32>
      %44 = arith.negf %43 : vector<2x32xf32>
      %45 = math.exp %44 : vector<2x32xf32>
      %cst_47 = arith.constant 1.000000e+00 : f32
      %46 = vector.broadcast %cst_47 : f32 to vector<2x32xf32>
      %47 = arith.addf %46, %45 : vector<2x32xf32>
      %48 = arith.divf %46, %47 : vector<2x32xf32>
      %49 = vector.extract_strided_slice %35 {offsets = [0, 32], sizes = [2, 32], strides = [1, 1]} : vector<2x96xf32> to vector<2x32xf32>
      %50 = vector.extract_strided_slice %40 {offsets = [0, 32], sizes = [2, 32], strides = [1, 1]} : vector<2x96xf32> to vector<2x32xf32>
      %51 = arith.addf %49, %50 : vector<2x32xf32>
      %52 = arith.negf %51 : vector<2x32xf32>
      %53 = math.exp %52 : vector<2x32xf32>
      %cst_48 = arith.constant 1.000000e+00 : f32
      %54 = vector.broadcast %cst_48 : f32 to vector<2x32xf32>
      %55 = arith.addf %54, %53 : vector<2x32xf32>
      %56 = arith.divf %54, %55 : vector<2x32xf32>
      %57 = vector.extract_strided_slice %35 {offsets = [0, 64], sizes = [2, 32], strides = [1, 1]} : vector<2x96xf32> to vector<2x32xf32>
      %58 = vector.extract_strided_slice %40 {offsets = [0, 64], sizes = [2, 32], strides = [1, 1]} : vector<2x96xf32> to vector<2x32xf32>
      %59 = arith.mulf %48, %58 : vector<2x32xf32>
      %60 = arith.addf %57, %59 : vector<2x32xf32>
      %61 = math.tanh %60 : vector<2x32xf32>
      %cst_49 = arith.constant 1.000000e+00 : f32
      %62 = vector.broadcast %cst_49 : f32 to vector<2x32xf32>
      %63 = arith.subf %62, %56 : vector<2x32xf32>
      %64 = arith.mulf %63, %61 : vector<2x32xf32>
      %65 = arith.mulf %56, %arg17 : vector<2x32xf32>
      %66 = arith.addf %64, %65 : vector<2x32xf32>
      %67 = vector.broadcast %arg16 : i32 to vector<2x1xi32>
      %68 = arith.cmpi slt, %67, %16 : vector<2x1xi32>
      %69 = vector.shape_cast %68 : vector<2x1xi1> to vector<2x1xi1>
      %70 = vector.broadcast %69 : vector<2x1xi1> to vector<2x32xi1>
      %71 = arith.select %70, %66, %arg17 : vector<2x32xi1>, vector<2x32xf32>
      %cst_50 = arith.constant 0.000000e+00 : f32
      %72 = vector.shape_cast %68 : vector<2x1xi1> to vector<2x1xi1>
      %73 = vector.broadcast %72 : vector<2x1xi1> to vector<2x32xi1>
      %74 = vector.broadcast %cst_50 : f32 to vector<2x32xf32>
      %75 = arith.select %73, %66, %74 : vector<2x32xi1>, vector<2x32xf32>
      %76 = arith.index_cast %arg16 : i32 to index
      %c0_51 = arith.constant 0 : index
      %c0_52 = arith.constant 0 : index
      %77 = vector.load %arg14[%76, %c0_51, %c0_52] : memref<16x2x32xf32, #tpu.memory_space<vmem>>, vector<1x2x32xf32>
      %78 = vector.shape_cast %77 : vector<1x2x32xf32> to vector<2x32xf32>
      %79 = vector.shape_cast %75 : vector<2x32xf32> to vector<1x2x32xf32>
      tpu.vector_store %arg14[%76, %c0_51, %c0_52], %79 {strides = array<i32>} : memref<16x2x32xf32, #tpu.memory_space<vmem>>, vector<1x2x32xf32>,
      scf.yield %71 : vector<2x32xf32>
    }
    %c16_i32_20 = arith.constant 16 : i32
    %c0_21 = arith.constant 0 : index
    %c0_22 = arith.constant 0 : index
    %c0_23 = arith.constant 0 : index
    %20 = vector.load %arg11[%c0_21, %c0_22, %c0_23] : memref<2x2x32xf32, #tpu.memory_space<vmem>>, vector<1x2x32xf32>
    %21 = vector.shape_cast %20 : vector<1x2x32xf32> to vector<2x32xf32>
    %22 = vector.shape_cast %19 : vector<2x32xf32> to vector<1x2x32xf32>
    tpu.vector_store %arg11[%c0_21, %c0_22, %c0_23], %22 {strides = array<i32>} : memref<2x2x32xf32, #tpu.memory_space<vmem>>, vector<1x2x32xf32>,
    %cst_24 = arith.constant 0.000000e+00 : f32
    %23 = vector.broadcast %cst_24 : f32 to vector<2x32xf32>
    %c0_i32_25 = arith.constant 0 : i32
    %c16_i32_26 = arith.constant 16 : i32
    %24 = arith.addi %c0_i32_25, %c16_i32_26 : i32
    %c1_i32_27 = arith.constant 1 : i32
    %25 = scf.for %arg16 = %c0_i32_25 to %24 step %c1_i32_27 iter_args(%arg17 = %23) -> (vector<2x32xf32>)  : i32 {
      %c15_i32 = arith.constant 15 : i32
      %33 = arith.subi %c15_i32, %arg16 : i32
      %34 = arith.index_cast %33 : i32 to index
      %c0_40 = arith.constant 0 : index
      %c0_41 = arith.constant 0 : index
      %35 = vector.load %arg13[%34, %c0_40, %c0_41] : memref<16x2x96xf32, #tpu.memory_space<vmem>>, vector<1x2x96xf32>
      %36 = vector.shape_cast %35 : vector<1x2x96xf32> to vector<2x96xf32>
      %c0_42 = arith.constant 0 : index
      %c0_43 = arith.constant 0 : index
      %37 = vector.load %arg7[%c0_42, %c0_43] : memref<32x96xf32, #tpu.memory_space<vmem>>, vector<32x96xf32>
      %cst_44 = arith.constant dense<0.000000e+00> : vector<2x96xf32>
      %38 = tpu.matmul %arg17, %37, %cst_44 {dimension_numbers = #tpu.dot_dimension_numbers<[1], [0], [0], [1], [0, 0, 1, 1], [], []>} : vector<2x32xf32>, vector<32x96xf32>, vector<2x96xf32> -> vector<2x96xf32>
      %c0_45 = arith.constant 0 : index
      %c0_46 = arith.constant 0 : index
      %39 = vector.load %arg9[%c0_45, %c0_46] : memref<1x96xf32, #tpu.memory_space<vmem>>, vector<1x96xf32>
      %40 = vector.broadcast %39 : vector<1x96xf32> to vector<2x96xf32>
      %41 = arith.addf %38, %40 : vector<2x96xf32>
      %42 = vector.extract_strided_slice %36 {offsets = [0, 0], sizes = [2, 32], strides = [1, 1]} : vector<2x96xf32> to vector<2x32xf32>
      %43 = vector.extract_strided_slice %41 {offsets = [0, 0], sizes = [2, 32], strides = [1, 1]} : vector<2x96xf32> to vector<2x32xf32>
      %44 = arith.addf %42, %43 : vector<2x32xf32>
      %45 = arith.negf %44 : vector<2x32xf32>
      %46 = math.exp %45 : vector<2x32xf32>
      %cst_47 = arith.constant 1.000000e+00 : f32
      %47 = vector.broadcast %cst_47 : f32 to vector<2x32xf32>
      %48 = arith.addf %47, %46 : vector<2x32xf32>
      %49 = arith.divf %47, %48 : vector<2x32xf32>
      %50 = vector.extract_strided_slice %36 {offsets = [0, 32], sizes = [2, 32], strides = [1, 1]} : vector<2x96xf32> to vector<2x32xf32>
      %51 = vector.extract_strided_slice %41 {offsets = [0, 32], sizes = [2, 32], strides = [1, 1]} : vector<2x96xf32> to vector<2x32xf32>
      %52 = arith.addf %50, %51 : vector<2x32xf32>
      %53 = arith.negf %52 : vector<2x32xf32>
      %54 = math.exp %53 : vector<2x32xf32>
      %cst_48 = arith.constant 1.000000e+00 : f32
      %55 = vector.broadcast %cst_48 : f32 to vector<2x32xf32>
      %56 = arith.addf %55, %54 : vector<2x32xf32>
      %57 = arith.divf %55, %56 : vector<2x32xf32>
      %58 = vector.extract_strided_slice %36 {offsets = [0, 64], sizes = [2, 32], strides = [1, 1]} : vector<2x96xf32> to vector<2x32xf32>
      %59 = vector.extract_strided_slice %41 {offsets = [0, 64], sizes = [2, 32], strides = [1, 1]} : vector<2x96xf32> to vector<2x32xf32>
      %60 = arith.mulf %49, %59 : vector<2x32xf32>
      %61 = arith.addf %58, %60 : vector<2x32xf32>
      %62 = math.tanh %61 : vector<2x32xf32>
      %cst_49 = arith.constant 1.000000e+00 : f32
      %63 = vector.broadcast %cst_49 : f32 to vector<2x32xf32>
      %64 = arith.subf %63, %57 : vector<2x32xf32>
      %65 = arith.mulf %64, %62 : vector<2x32xf32>
      %66 = arith.mulf %57, %arg17 : vector<2x32xf32>
      %67 = arith.addf %65, %66 : vector<2x32xf32>
      %68 = vector.broadcast %33 : i32 to vector<2x1xi32>
      %69 = arith.cmpi slt, %68, %16 : vector<2x1xi32>
      %70 = vector.shape_cast %69 : vector<2x1xi1> to vector<2x1xi1>
      %71 = vector.broadcast %70 : vector<2x1xi1> to vector<2x32xi1>
      %72 = arith.select %71, %67, %arg17 : vector<2x32xi1>, vector<2x32xf32>
      %cst_50 = arith.constant 0.000000e+00 : f32
      %73 = vector.shape_cast %69 : vector<2x1xi1> to vector<2x1xi1>
      %74 = vector.broadcast %73 : vector<2x1xi1> to vector<2x32xi1>
      %75 = vector.broadcast %cst_50 : f32 to vector<2x32xf32>
      %76 = arith.select %74, %67, %75 : vector<2x32xi1>, vector<2x32xf32>
      %77 = arith.index_cast %33 : i32 to index
      %c0_51 = arith.constant 0 : index
      %c0_52 = arith.constant 0 : index
      %78 = vector.load %arg15[%77, %c0_51, %c0_52] : memref<16x2x32xf32, #tpu.memory_space<vmem>>, vector<1x2x32xf32>
      %79 = vector.shape_cast %78 : vector<1x2x32xf32> to vector<2x32xf32>
      %80 = vector.shape_cast %76 : vector<2x32xf32> to vector<1x2x32xf32>
      tpu.vector_store %arg15[%77, %c0_51, %c0_52], %80 {strides = array<i32>} : memref<16x2x32xf32, #tpu.memory_space<vmem>>, vector<1x2x32xf32>,
      scf.yield %72 : vector<2x32xf32>
    }
    %c16_i32_28 = arith.constant 16 : i32
    %c1 = arith.constant 1 : index
    %c0_29 = arith.constant 0 : index
    %c0_30 = arith.constant 0 : index
    %26 = vector.load %arg11[%c1, %c0_29, %c0_30] : memref<2x2x32xf32, #tpu.memory_space<vmem>>, vector<1x2x32xf32>
    %27 = vector.shape_cast %26 : vector<1x2x32xf32> to vector<2x32xf32>
    %28 = vector.shape_cast %25 : vector<2x32xf32> to vector<1x2x32xf32>
    tpu.vector_store %arg11[%c1, %c0_29, %c0_30], %28 {strides = array<i32>} : memref<2x2x32xf32, #tpu.memory_space<vmem>>, vector<1x2x32xf32>,
    %c0_31 = arith.constant 0 : index
    %c0_32 = arith.constant 0 : index
    %c0_33 = arith.constant 0 : index
    %29 = vector.load %arg14[%c0_31, %c0_32, %c0_33] : memref<16x2x32xf32, #tpu.memory_space<vmem>>, vector<16x2x32xf32>
    %c0_34 = arith.constant 0 : index
    %c0_35 = arith.constant 0 : index
    %c0_36 = arith.constant 0 : index
    %30 = vector.load %arg15[%c0_34, %c0_35, %c0_36] : memref<16x2x32xf32, #tpu.memory_space<vmem>>, vector<16x2x32xf32>
    %31 = tpu.concatenate %29, %30 in 2 : vector<16x2x32xf32>, vector<16x2x32xf32> -> vector<16x2x64xf32>
    %c0_37 = arith.constant 0 : index
    %c0_38 = arith.constant 0 : index
    %c0_39 = arith.constant 0 : index
    %32 = vector.load %arg10[%c0_37, %c0_38, %c0_39] : memref<16x2x64xf32, #tpu.memory_space<vmem>>, vector<16x2x64xf32>
    tpu.vector_store %arg10[%c0_37, %c0_38, %c0_39], %31 {strides = array<i32>} : memref<16x2x64xf32, #tpu.memory_space<vmem>>, vector<16x2x64xf32>,
    return
  }
}

</mosaic_0001>

<bundles_post_ra>
// kernel: encoder_forward.3
= control target key start
LH: loop header
LB: loop body
LE: loop exit
PB: predicated region body
PF: predicated region fallthrough
CT: control target
= control target key end

     0   :  { %17 = vsyncpa [#allocation7], 0  ;;  %s1384_s0 = inlined_call_operand.vmem [shape: s32[2,1], index: 0, kind: input, shape index: {}]   ;;  %s1385_s1 = inlined_call_operand.vmem [shape: f32[16,2,64], index: 1, kind: input, shape index: {}]   ;;  %s1386_s2 = inlined_call_operand.hbm [shape: f32[64,96], index: 2, kind: input, shape index: {}]   ;;  %s1387_s3 = inlined_call_operand.hbm [shape: f32[32,96], index: 3, kind: input, shape index: {}]   ;;  %s1388_s4 = inlined_call_operand.vmem [shape: f32[1,96], index: 4, kind: input, shape index: {}]   ;;  %s1389_s5 = inlined_call_operand.vmem [shape: f32[1,96], index: 5, kind: input, shape index: {}]   ;;  %s1390_s6 = inlined_call_operand.hbm [shape: f32[64,96], index: 6, kind: input, shape index: {}]   ;;  %s1391_s7 = inlined_call_operand.hbm [shape: f32[32,96], index: 7, kind: input, shape index: {}]   ;;  %s1392_s8 = inlined_call_operand.vmem [shape: f32[1,96], index: 8, kind: input, shape index: {}]   ;;  %s1393_s9 = inlined_call_operand.hbm [shape: f32[1,96], index: 9, kind: input, shape index: {}]   ;;  %s1394_s10 = inlined_call_operand.vmem [shape: f32[16,2,64], index: 10, kind: output, shape index: {0}]   ;;  %s1395_s11 = inlined_call_operand.vmem [shape: f32[2,2,32], index: 11, kind: output, shape index: {1}]  }
   0x1   :  { %18 = vsyncpa [#allocation9], 0 }
   0x2   :  { %19 = vsyncpa [#allocation12], 0  ;;  %s41_s19 = sshll.u32 %s1387_s3, 4  ;;  %s1019_s20 = smov [#allocation8]   ;;  %s42_s19 = int_to_ptr.hbm [resolvable:$true] %s41_s19 }
   0x3   :  { %s43_s21 = sshll.u32 %s1019_s20, 4  ;;  %s71_s24 = sshll.u32 %s1391_s7, 4  ;;  %s44_s21 = int_to_ptr.vmem [resolvable:$true] %s43_s21  ;;  %s72_s24 = int_to_ptr.hbm [resolvable:$true] %s71_s24 }
   0x4   :  { %s1020_s25 = smov 128   ;;  %s1021_s26 = smov 8  }
   0x5   :  { %49 = dma.hbm_to_vmem [thread:$0]  %s42_s19, 512, %s44_s21, [#allocation9], %s1020_s25, %s1020_s25, %s1021_s26  }
   0x6   :  { %s1022_s27 = smov [#allocation11]   ;;  %s28_s12 = sshll.u32 %s1386_s2, 4  ;;  %s29_s12 = int_to_ptr.hbm [resolvable:$true] %s28_s12 }
   0x7   :  { %s73_s28 = sshll.u32 %s1022_s27, 4  ;;  %s58_s14 = sshll.u32 %s1390_s6, 4  ;;  %s74_s28 = int_to_ptr.vmem [resolvable:$true] %s73_s28  ;;  %s59_s14 = int_to_ptr.hbm [resolvable:$true] %s58_s14 }
   0x8   :  { %79 = dma.hbm_to_vmem [thread:$0]  %s72_s24, 512, %s74_s28, [#allocation12], %s1020_s25, %s1020_s25, %s1021_s26  }
   0x9   :  { %s1023_s15 = smov [#allocation6]   ;;  %s1024_s7 = smov [#allocation10]  }
   0xa   :  { %s30_s16 = sshll.u32 %s1023_s15, 4  ;;  %s60_s17 = sshll.u32 %s1024_s7, 4  ;;  %s31_s16 = int_to_ptr.vmem [resolvable:$true] %s30_s16  ;;  %s61_s17 = int_to_ptr.vmem [resolvable:$true] %s60_s17 }
   0xb   :  { %36 = dma.hbm_to_vmem [thread:$0]  %s29_s12, 1024, %s31_s16, [#allocation7], %s1020_s25, %s1020_s25, %s1021_s26  }
   0xc   :  { %s87_s20 = sshll.u32 %s1393_s9, 4  ;;  %s1025_s2 = smov [#allocation13]   ;;  %s88_s20 = int_to_ptr.hbm [resolvable:$true] %s87_s20 }
   0xd   :  { %66 = dma.hbm_to_vmem [thread:$0]  %s59_s14, 1024, %s61_s17, [#allocation9], %s1020_s25, %s1020_s25, %s1021_s26  }
   0xe   :  { %s89_s21 = sshll.u32 %s1025_s2, 4  ;;  %s90_s21 = int_to_ptr.vmem [resolvable:$true] %s89_s21 }
   0xf   :  { %92 = dma.hbm_to_vmem [thread:$0]  %s88_s20, 16, %s90_s21, [#allocation12]  }
  0x10   :  { %997 = dma.done.wait [#allocation7], 1024  }
  0x11   :  { %998 = vsyncadd [#allocation7], 4294966272 }
  0x12   :  { %999 = dma.done.wait [#allocation9], 1536  }
  0x13   :  { %1000 = vsyncadd [#allocation9], 4294965760 }
  0x14   :  { %1001 = dma.done.wait [#allocation12], 528  }
  0x15   :  { %1002 = vsyncadd [#allocation12], 4294966768  ;;  %v1112_v0 = vld [vmem:[%s1384_s0] sm:$0x3]  ;;  %v135_v3 = vld [vmem:[#allocation6 + $0x30] sm:$0xff]  ;;  %vm184_vm0 = vcmask 523264  }
  0x16   :  { %v136_v1 = vld [vmem:[#allocation6 + $0x38] sm:$0xff]  ;;  %v273_v4 = vld [vmem:[#allocation10 + $0x30] sm:$0xff]  ;;  %v134_v5 = vld [vmem:[#allocation6 + $0x28] sm:$0xff]  ;;  %vm250_vm1 = vcmask 779264  }
  0x17   :  { %v274_v2 = vld [vmem:[#allocation10 + $0x38] sm:$0xff]  ;;  %778 = vmatpush.msra.mxu2 %v136_v1  ;;  %v272_v6 = vld [vmem:[#allocation10 + $0x28] sm:$0xff]  ;;  %201 = vmatpush.msra.mxu0 %v136_v1  ;;  %v133_v7 = vld [vmem:[#allocation6 + $0x20] sm:$0xff] }
  0x18   :  { %786 = vmatpush.msra.mxu3 %v274_v2  ;;  %322 = vmatpush.msra.mxu1 %v274_v2  ;;  %v271_v8 = vld [vmem:[#allocation10 + $0x20] sm:$0xff]  ;;  %v1117_v9 = vld [vmem:[%s1385_s1] sm:$0x3]  ;;  %v1122_v12 = vld [vmem:[%s1385_s1 + $0x2] sm:$0x3] }
  0x19   :  { %779 = vmatpush.msra.mxu2 %v135_v3  ;;  %202 = vmatpush.msra.mxu0 %v135_v3  ;;  %v132_v10 = vld [vmem:[#allocation6 + $0x18] sm:$0xff]  ;;  %v131_v14 = vld [vmem:[#allocation6 + $0x10] sm:$0xff]  ;;  %157 = vst [vmem:[#allocation1] ss:$4 sm:$0xff] %v1117_v9  ;;  %v117_v17 = vld [vmem:[%s1385_s1 + $0x8] sm:$0x3] }
  0x1a   :  { %787 = vmatpush.msra.mxu3 %v273_v4  ;;  %323 = vmatpush.msra.mxu1 %v273_v4  ;;  %v270_v11 = vld [vmem:[#allocation10 + $0x18] sm:$0xff]  ;;  %v269_v15 = vld [vmem:[#allocation10 + $0x10] sm:$0xff]  ;;  %159 = vst [vmem:[#allocation1 + $0x1] ss:$4 sm:$0xff] %v1122_v12  ;;  %v130_v18 = vld [vmem:[#allocation6 + $0x8] sm:$0xff] }
  0x1b   :  { %780 = vmatpush.msra.mxu2 %v134_v5  ;;  %203 = vmatpush.msra.mxu0 %v134_v5  ;;  %v115_v13 = vld [vmem:[%s1385_s1 + $0x4] sm:$0x3]  ;;  %v116_v16 = vld [vmem:[%s1385_s1 + $0x6] sm:$0x3]  ;;  %v268_v19 = vld [vmem:[#allocation10 + $0x8] sm:$0xff] }
  0x1c   :  { %788 = vmatpush.msra.mxu3 %v272_v6  ;;  %324 = vmatpush.msra.mxu1 %v272_v6  ;;  %161 = vst [vmem:[#allocation1 + $0x2] ss:$4 sm:$0xff] %v115_v13  ;;  %v118_v20 = vld [vmem:[%s1385_s1 + $0xa] sm:$0x3]  ;;  %v119_v23 = vld [vmem:[%s1385_s1 + $0xc] sm:$0x3] }
  0x1d   :  { %781 = vmatpush.msra.mxu2 %v133_v7  ;;  %204 = vmatpush.msra.mxu0 %v133_v7  ;;  %v129_v21 = vld [vmem:[#allocation6] sm:$0xff]  ;;  %163 = vst [vmem:[#allocation1 + $0x3] ss:$4 sm:$0xff] %v116_v16  ;;  %v121_v25 = vld [vmem:[%s1385_s1 + $0x10] sm:$0x3] }
  0x1e   :  { %789 = vmatpush.msra.mxu3 %v271_v8  ;;  %325 = vmatpush.msra.mxu1 %v271_v8  ;;  %v267_v22 = vld [vmem:[#allocation10] sm:$0xff]  ;;  %165 = vst [vmem:[#allocation1 + $0x20] ss:$4 sm:$0xff] %v117_v17  ;;  %v122_v26 = vld [vmem:[%s1385_s1 + $0x12] sm:$0x3] }
  0x1f   :  { %782 = vmatpush.msra.mxu2 %v132_v10  ;;  %205 = vmatpush.msra.mxu0 %v132_v10  ;;  %v120_v24 = vld [vmem:[%s1385_s1 + $0xe] sm:$0x3]  ;;  %167 = vst [vmem:[#allocation1 + $0x21] ss:$4 sm:$0xff] %v118_v20  ;;  %v123_v27 = vld [vmem:[%s1385_s1 + $0x14] sm:$0x3] }
  0x20   :  { %790 = vmatpush.msra.mxu3 %v270_v11  ;;  %326 = vmatpush.msra.mxu1 %v270_v11  ;;  %169 = vst [vmem:[#allocation1 + $0x22] ss:$4 sm:$0xff] %v119_v23  ;;  %v124_v29 = vld [vmem:[%s1385_s1 + $0x16] sm:$0x3]  ;;  %v125_v30 = vld [vmem:[%s1385_s1 + $0x18] sm:$0x3] }
  0x21   :  { %783 = vmatpush.msra.mxu2 %v131_v14  ;;  %206 = vmatpush.msra.mxu0 %v131_v14  ;;  %171 = vst [vmem:[#allocation1 + $0x23] ss:$4 sm:$0xff] %v120_v24  ;;  %v126_v31 = vld [vmem:[%s1385_s1 + $0x1a] sm:$0x3]  ;;  %v127_v32 = vld [vmem:[%s1385_s1 + $0x1c] sm:$0x3] }
  0x22   :  { %791 = vmatpush.msra.mxu3 %v269_v15  ;;  %327 = vmatpush.msra.mxu1 %v269_v15  ;;  %v128_v34 = vld [vmem:[%s1385_s1 + $0x1e] sm:$0x3]  ;;  %v841_v41 = vld [vmem:[%s1388_s4] ss:$0 sm:$0xff] }
  0x23   :  { %784 = vmatpush.msra.mxu2 %v130_v18  ;;  %207 = vmatpush.msra.mxu0 %v130_v18  ;;  %v842_v53 = vld [vmem:[%s1392_s8] ss:$0 sm:$0xff]  ;;  %s1218_s8 = smov 0  }
  0x24   :  { %792 = vmatpush.msra.mxu3 %v268_v19  ;;  %328 = vmatpush.msra.mxu1 %v268_v19  ;;  %v172_v28 = vld.sshfl [vmem:[#allocation1] sm:$0xff pattern:$0x73625140] }
  0x25   :  { %785 = vmatpush.msra.mxu2 %v129_v21  ;;  %208 = vmatpush.msra.mxu0 %v129_v21  ;;  %174 = vst [vmem:[#allocation1] ss:$4 sm:$0xff] %v121_v25 }
  0x26   :  { %793 = vmatpush.msra.mxu3 %v267_v22  ;;  %329 = vmatpush.msra.mxu1 %v267_v22  ;;  %175 = vst [vmem:[#allocation1 + $0x1] ss:$4 sm:$0xff] %v122_v26 }
  0x27   :  { %763 = vmatmul.msk.f32.vlgmr.msra.gmra.mxu0 %vm184_vm0, %v172_v28  ;;  %176 = vst [vmem:[#allocation1 + $0x2] ss:$4 sm:$0xff] %v123_v27 }
  0x28   :  { %177 = vst [vmem:[#allocation1 + $0x3] ss:$4 sm:$0xff] %v124_v29  ;;  %v173_v33 = vld.sshfl [vmem:[#allocation1 + $0x20] sm:$0xff pattern:$0x73625140] }
  0x29   :  { %178 = vst [vmem:[#allocation1 + $0x20] ss:$4 sm:$0xff] %v125_v30 }
  0x2a   :  { %179 = vst [vmem:[#allocation1 + $0x21] ss:$4 sm:$0xff] %v126_v31 }
  0x2b   :  { %180 = vst [vmem:[#allocation1 + $0x22] ss:$4 sm:$0xff] %v127_v32 }
  0x2c   :  { %181 = vst [vmem:[#allocation1 + $0x23] ss:$4 sm:$0xff] %v128_v34 }
  0x2f   :  { %764 = vmatmul.msk.f32.gmra.mxu0 %vm184_vm0, %v173_v33  ;;  %v182_v35 = vld.sshfl [vmem:[#allocation1] sm:$0xff pattern:$0x73625140] }
  0x30   :  { %765 = vmatmul.msk.f32.vlgmr.msra.gmra.mxu2 %vm184_vm0, %v182_v35  ;;  %279 = vst [vmem:[#allocation1] ss:$4 sm:$0xff] %v1117_v9 }
  0x31   :  { %281 = vst [vmem:[#allocation1 + $0x1] ss:$4 sm:$0xff] %v1122_v12 }
  0x32   :  { %283 = vst [vmem:[#allocation1 + $0x2] ss:$4 sm:$0xff] %v115_v13 }
  0x33   :  { %285 = vst [vmem:[#allocation1 + $0x3] ss:$4 sm:$0xff] %v116_v16  ;;  %v183_v36 = vld.sshfl [vmem:[#allocation1 + $0x20] sm:$0xff pattern:$0x73625140] }
  0x34   :  { %287 = vst [vmem:[#allocation1 + $0x20] ss:$4 sm:$0xff] %v117_v17 }
  0x35   :  { %289 = vst [vmem:[#allocation1 + $0x21] ss:$4 sm:$0xff] %v118_v20  ;;  %v1216_v20 = vmov 0.0  }
  0x36   :  { %291 = vst [vmem:[#allocation1 + $0x22] ss:$4 sm:$0xff] %v119_v23 }
  0x37   :  { %293 = vst [vmem:[#allocation1 + $0x23] ss:$4 sm:$0xff] %v120_v24 }
  0x38   :  { %766 = vmatmul.msk.f32.gmra.mxu2 %vm184_vm0, %v183_v36 }
  0x3a   :  { %v294_v37 = vld.sshfl [vmem:[#allocation1] sm:$0xff pattern:$0x73625140] }
  0x3b   :  { %296 = vst [vmem:[#allocation1] ss:$4 sm:$0xff] %v121_v25  ;;  %767 = vmatmul.msk.f32.vlgmr.msra.gmra.mxu1 %vm184_vm0, %v294_v37 }
  0x3c   :  { %297 = vst [vmem:[#allocation1 + $0x1] ss:$4 sm:$0xff] %v122_v26 }
  0x3d   :  { %298 = vst [vmem:[#allocation1 + $0x2] ss:$4 sm:$0xff] %v123_v27 }
  0x3e   :  { %299 = vst [vmem:[#allocation1 + $0x3] ss:$4 sm:$0xff] %v124_v29  ;;  %v295_v38 = vld.sshfl [vmem:[#allocation1 + $0x20] sm:$0xff pattern:$0x73625140] }
  0x3f   :  { %300 = vst [vmem:[#allocation1 + $0x20] ss:$4 sm:$0xff] %v125_v30 }
  0x40   :  { %301 = vst [vmem:[#allocation1 + $0x21] ss:$4 sm:$0xff] %v126_v31 }
  0x41   :  { %302 = vst [vmem:[#allocation1 + $0x22] ss:$4 sm:$0xff] %v127_v32 }
  0x42   :  { %303 = vst [vmem:[#allocation1 + $0x23] ss:$4 sm:$0xff] %v128_v34 }
  0x43   :  { %768 = vmatmul.msk.f32.gmra.mxu1 %vm184_vm0, %v295_v38 }
  0x45   :  { %v304_v39 = vld.sshfl [vmem:[#allocation1] sm:$0xff pattern:$0x73625140] }
  0x46   :  { %769 = vmatmul.msk.f32.vlgmr.msra.gmra.mxu3 %vm184_vm0, %v304_v39 }
  0x49   :  { %v305_v40 = vld.sshfl [vmem:[#allocation1 + $0x20] sm:$0xff pattern:$0x73625140] }
  0x4e   :  { %770 = vmatmul.msk.f32.gmra.mxu3 %vm184_vm0, %v305_v40 }
  0xa4   :  { %v210_v42 = vpop.f32.mrf.mxu0 }
  0xa5   :  { %v211_v43 = vadd.f32 %v841_v41, %v210_v42 }
  0xa7   :  { %v226_v44 = vrot.slane %v211_v43, 2  ;;  %v227_v45 = vrot.slane %v211_v43, 4  ;;  %v228_v46 = vrot.slane %v211_v43, 6  ;;  %251 = vst.msk [vmem:[#allocation2] sm:$0x3] %vm250_vm1, %v211_v43 }
  0xa9   :  { %252 = vst.msk [vmem:[#allocation2 + $0x2] sm:$0x3] %vm250_vm1, %v226_v44 }
  0xaa   :  { %253 = vst.msk [vmem:[#allocation2 + $0x4] sm:$0x3] %vm250_vm1, %v227_v45 }
  0xab   :  { %254 = vst.msk [vmem:[#allocation2 + $0x6] sm:$0x3] %vm250_vm1, %v228_v46 }
  0xac   :  { %v213_v47 = vpop.f32.mrf.mxu0 }
  0xad   :  { %v214_v48 = vadd.f32 %v841_v41, %v213_v47 }
  0xaf   :  { %v229_v50 = vrot.slane %v214_v48, 2  ;;  %v230_v51 = vrot.slane %v214_v48, 4  ;;  %255 = vst.msk [vmem:[#allocation2 + $0x8] sm:$0x3] %vm250_vm1, %v214_v48  ;;  %v231_v58 = vrot.slane %v214_v48, 6 }
  0xb1   :  { %256 = vst.msk [vmem:[#allocation2 + $0xa] sm:$0x3] %vm250_vm1, %v229_v50 }
  0xb2   :  { %257 = vst.msk [vmem:[#allocation2 + $0xc] sm:$0x3] %vm250_vm1, %v230_v51 }
  0xb3   :  { %v216_v49 = vpop.f32.mrf.mxu2  ;;  %258 = vst.msk [vmem:[#allocation2 + $0xe] sm:$0x3] %vm250_vm1, %v231_v58 }
  0xb4   :  { %v217_v52 = vadd.f32 %v841_v41, %v216_v49 }
  0xb6   :  { %v232_v54 = vrot.slane %v217_v52, 2  ;;  %v233_v55 = vrot.slane %v217_v52, 4  ;;  %v234_v56 = vrot.slane %v217_v52, 6  ;;  %259 = vst.msk [vmem:[#allocation2 + $0x10] sm:$0x3] %vm250_vm1, %v217_v52 }
  0xb8   :  { %260 = vst.msk [vmem:[#allocation2 + $0x12] sm:$0x3] %vm250_vm1, %v232_v54  ;;  %v331_v57 = vpop.f32.mrf.mxu1 }
  0xb9   :  { %261 = vst.msk [vmem:[#allocation2 + $0x14] sm:$0x3] %vm250_vm1, %v233_v55  ;;  %v332_v59 = vadd.f32 %v842_v53, %v331_v57 }
  0xba   :  { %262 = vst.msk [vmem:[#allocation2 + $0x16] sm:$0x3] %vm250_vm1, %v234_v56 }
  0xbb   :  { %v347_v60 = vrot.slane %v332_v59, 2  ;;  %v348_v61 = vrot.slane %v332_v59, 4  ;;  %v349_v62 = vrot.slane %v332_v59, 6  ;;  %371 = vst.msk [vmem:[#allocation3] sm:$0x3] %vm250_vm1, %v332_v59  ;;  %v219_v63 = vpop.f32.mrf.mxu2 }
  0xbc   :  { %v220_v1 = vadd.f32 %v841_v41, %v219_v63 }
  0xbd   :  { %372 = vst.msk [vmem:[#allocation3 + $0x2] sm:$0x3] %vm250_vm1, %v347_v60 }
  0xbe   :  { %373 = vst.msk [vmem:[#allocation3 + $0x4] sm:$0x3] %vm250_vm1, %v348_v61  ;;  %v235_v2 = vrot.slane %v220_v1, 2  ;;  %v236_v3 = vrot.slane %v220_v1, 4  ;;  %v237_v4 = vrot.slane %v220_v1, 6 }
  0xbf   :  { %374 = vst.msk [vmem:[#allocation3 + $0x6] sm:$0x3] %vm250_vm1, %v349_v62 }
  0xc0   :  { %263 = vst.msk [vmem:[#allocation2 + $0x18] sm:$0x3] %vm250_vm1, %v220_v1  ;;  %v334_v5 = vpop.f32.mrf.mxu1 }
  0xc1   :  { %264 = vst.msk [vmem:[#allocation2 + $0x1a] sm:$0x3] %vm250_vm1, %v235_v2  ;;  %v335_v6 = vadd.f32 %v842_v53, %v334_v5 }
  0xc2   :  { %265 = vst.msk [vmem:[#allocation2 + $0x1c] sm:$0x3] %vm250_vm1, %v236_v3 }
  0xc3   :  { %266 = vst.msk [vmem:[#allocation2 + $0x1e] sm:$0x3] %vm250_vm1, %v237_v4  ;;  %v350_v7 = vrot.slane %v335_v6, 2  ;;  %v351_v8 = vrot.slane %v335_v6, 4  ;;  %v352_v9 = vrot.slane %v335_v6, 6 }
  0xc4   :  { %375 = vst.msk [vmem:[#allocation3 + $0x8] sm:$0x3] %vm250_vm1, %v335_v6 }
  0xc5   :  { %376 = vst.msk [vmem:[#allocation3 + $0xa] sm:$0x3] %vm250_vm1, %v350_v7 }
  0xc6   :  { %377 = vst.msk [vmem:[#allocation3 + $0xc] sm:$0x3] %vm250_vm1, %v351_v8 }
  0xc7   :  { %378 = vst.msk [vmem:[#allocation3 + $0xe] sm:$0x3] %vm250_vm1, %v352_v9 }
  0xc9   :  { %v337_v10 = vpop.f32.mrf.mxu3 }
  0xca   :  { %v338_v11 = vadd.f32 %v842_v53, %v337_v10 }
  0xcc   :  { %v353_v12 = vrot.slane %v338_v11, 2  ;;  %v354_v13 = vrot.slane %v338_v11, 4  ;;  %v355_v14 = vrot.slane %v338_v11, 6  ;;  %379 = vst.msk [vmem:[#allocation3 + $0x10] sm:$0x3] %vm250_vm1, %v338_v11 }
  0xce   :  { %380 = vst.msk [vmem:[#allocation3 + $0x12] sm:$0x3] %vm250_vm1, %v353_v12 }
  0xcf   :  { %381 = vst.msk [vmem:[#allocation3 + $0x14] sm:$0x3] %vm250_vm1, %v354_v13 }
  0xd0   :  { %382 = vst.msk [vmem:[#allocation3 + $0x16] sm:$0x3] %vm250_vm1, %v355_v14 }
  0xd1   :  { %v340_v15 = vpop.f32.mrf.mxu3 }
  0xd2   :  { %v341_v16 = vadd.f32 %v842_v53, %v340_v15 }
  0xd4   :  { %v356_v17 = vrot.slane %v341_v16, 2  ;;  %v357_v18 = vrot.slane %v341_v16, 4  ;;  %v358_v19 = vrot.slane %v341_v16, 6  ;;  %383 = vst.msk [vmem:[#allocation3 + $0x18] sm:$0x3] %vm250_vm1, %v341_v16 }
  0xd6   :  { %384 = vst.msk [vmem:[#allocation3 + $0x1a] sm:$0x3] %vm250_vm1, %v356_v17 }
  0xd7   :  { %385 = vst.msk [vmem:[#allocation3 + $0x1c] sm:$0x3] %vm250_vm1, %v357_v18 }
  0xd8   :  { %386 = vst.msk [vmem:[#allocation3 + $0x1e] sm:$0x3] %vm250_vm1, %v358_v19 }
  0xd9 LB: > { %v401_v21 = vld [vmem:[#allocation8 + $0x18] sm:$0xff]  ;;  %v400_v22 = vld [vmem:[#allocation8 + $0x10] sm:$0xff]  ;;  %s1026_s30 = smov 96   ;;  %v399_v23 = vld [vmem:[#allocation8 + $0x8] sm:$0xff]  ;;  %vm409_vm2 = vcmask 261120   ;;  %s1027_s13 = smov 64   ;;  %v471_v46 = vstv %s1009_s8  ;;  %s1009_s8 = sphi %s1218_s8, %s393_s8   ;;  %v1005_v20 = vphi %v1216_v20, %v1396_v20  }
  0xda   : > { %424 = vmatpush.msra.mxu0 %v401_v21  ;;  %407 = vrot.lane.b32.xlu0 %v1005_v20, %s1026_s30  ;;  %v398_v24 = vld [vmem:[#allocation8] sm:$0xff]  ;;  %v845_v26 = vld [vmem:[%s1389_s5] ss:$0 sm:$0xff]  ;;  %s771_s14 = sshll.u32 %s1009_s8, 1  ;;  %v1028_v47 = vmov 0   ;;  %vm472_vm7 = vcmp.lt.s32.totalorder %v471_v46, %v1112_v0  ;;  %vm485_vm9 = vcmask 254976  }
  0xdb   : > { %s396_s15 = scalar_lea.vmem [#allocation2], %s771_s14  ;;  %843 = vset.pattern.permute.xlu2 %v1028_v47  ;;  %844 = vset.pattern.permute.xlu0 %v1028_v47  ;;  %v473_v48 = vsel %vm472_vm7, 1, %v1028_v47  ;;  %s484_s16 = scalar_lea.vmem [#allocation4], %s771_s14 }
  0xdc   : > { %425 = vmatpush.msra.mxu0 %v400_v22  ;;  %v397_v29 = vld [vmem:[%s396_s15] sm:$0x3]  ;;  %475 = vperm.xlu2 %843, %v473_v48   ;;  %s393_s8 = sadd.s32 1, %s1009_s8  }
  0xdd   : > { %p390_p0 = scmp.ge.s32.totalorder %s393_s8, 16  }
  0xde   : > { %426 = vmatpush.msra.mxu0 %v399_v23  ;;  %s1029_s7 = smov (%p390_p0), 96   ;;  %v1254_v62 = vmov (%p390_p0), 0.0   ;;  %s1256_s19 = smov (%p390_p0), 0  }
  0xe0   : > { %427 = vmatpush.msra.mxu0 %v398_v24 }
 0x136   : > { %v476_v53 = vpop.permute.xlu2 %475 }
 0x137   : > { %vm477_vm8 = vcmp.eq.s32.totalorder %v476_v53, 1 }
 0x14c   : > { %v408_v25 = vpop.permute.xlu0 %407 }
 0x14d   : > { %772 = vmatmul.msk.f32.vlgmr.msra.gmra.mxu0 %vm409_vm2, %v408_v25 }
 0x1ca   : > { %v429_v27 = vpop.f32.mrf.mxu0 }
 0x1cb   : > { %v430_v28 = vadd.f32 %v845_v26, %v429_v27 }
 0x1cd   : > { %453 = vrot.lane.b32.xlu0 %v430_v28, %s1027_s13  ;;  %v432_v30 = vadd.f32 %v430_v28, %v397_v29 }
 0x1cf   : > { %v773_v31 = vmul.f32 -1.442695, %v432_v30 }
 0x1d1   : > { %846 = vpow2.f32 %v773_v31 }
 0x1d7   : > { %v847_v32 = vpop.eup %846 }
 0x1d8   : > { %v436_v33 = vadd.f32 1.0, %v847_v32 }
 0x1da   : > { %848 = vrcp.f32 %v436_v33  ;;  %v448_v39 = vand.u32 2147483648, %v436_v33  ;;  %vm442_vm4 = vweird.f32 %v436_v33  ;;  %v446_v40 = vand.u32 2147483647, %v436_v33 }
 0x1dc   : > { %v449_v42 = vor.u32 1.1754944e-38, %v448_v39  ;;  %vm447_vm6 = vcmp.eq.f32.partialorder %v446_v40, 8.507059e+37 }
 0x1e0   : > { %v849_v34 = vpop.eup %848 }
 0x1e1   : > { %v438_v35 = vmul.f32 %v849_v34, %v436_v33  ;;  %vm443_vm3 = vweird.f32 %v849_v34 }
 0x1e2   : > { %vm444_vm5 = vmor %vm442_vm4, %vm443_vm3 }
 0x1e3   : > { %v439_v36 = vsub.f32 1.0, %v438_v35 }
 0x1e5   : > { %v440_v37 = vmul.f32 %v849_v34, %v439_v36 }
 0x1e7   : > { %v441_v38 = vadd.f32 %v849_v34, %v440_v37 }
 0x1e9   : > { %v445_v41 = vsel %vm444_vm5, %v849_v34, %v441_v38 }
 0x1ea   : > { %v450_v44 = vsel %vm447_vm6, %v449_v42, %v445_v41 }
 0x1eb   : > { %v463_v52 = vsub.f32 1.0, %v450_v44  ;;  %v469_v55 = vmul.f32 %v1005_v20, %v450_v44 }
 0x23f   : > { %v454_v43 = vpop.permute.xlu0 %453 }
 0x240   : > { %v456_v45 = vmul.f32 %v454_v43, %v450_v44 }
 0x242   : > { %458 = vrot.lane.b32.xlu1 %v456_v45, %s1027_s13 }
 0x2b4   : > { %v459_v49 = vpop.permute.xlu1 %458 }
 0x2b5   : > { %v461_v50 = vadd.f32 %v459_v49, %v397_v29 }
 0x2b7   : > { %850 = vtanh.f32 %v461_v50 }
 0x2bd   : > { %v851_v51 = vpop.eup %850 }
 0x2be   : > { %465 = vrot.lane.b32.xlu1 %v851_v51, %s1026_s30 }
 0x330   : > { %v466_v54 = vpop.permute.xlu1 %465 }
 0x331   : > { %v468_v56 = vmul.f32 %v466_v54, %v463_v52 }
 0x333   : > { %v470_v57 = vadd.f32 %v469_v55, %v468_v56 }
 0x335   : > { %v478_v58 = vsel %vm477_vm8, %v470_v57, %v1005_v20   ;;  %v479_v59 = vsel %vm477_vm8, %v470_v57, 0.0 }
 0x336   : > { %481 = vrot.lane.b32.xlu2 %v479_v59, %s1026_s30  ;;  %v1396_v20 = vmov %v478_v58  ;;  %488 = vrot.lane.b32.xlu0 (%p390_p0), %v478_v58, %s1029_s7 }
 0x38d   :  { %392 = sbr.rel (!%p390_p0) target bundleno = 217 (0xd9), region = 121 }
 0x390   : > { %v482_v60 = vpop.permute.xlu2 %481 }
 0x391   : > { %486 = vst.msk [vmem:[%s484_s16] sm:$0x3] %vm485_vm9, %v482_v60 }
 0x3a8   :  { %v489_v61 = vpop.permute.xlu0 %488 }
 0x3a9   :  { %492 = vst.msk [vmem:[%s1395_s11] sm:$0x3] %vm485_vm9, %v489_v61 }
 0x3aa LB: > { %v507_v63 = vld [vmem:[#allocation11 + $0x18] sm:$0xff]  ;;  %v506_v1 = vld [vmem:[#allocation11 + $0x10] sm:$0xff]  ;;  %s1030_s5 = smov 96   ;;  %v505_v2 = vld [vmem:[#allocation11 + $0x8] sm:$0xff]  ;;  %s1031_s20 = smov 64   ;;  %v1032_v26 = vmov 0   ;;  %s1017_s19 = sphi %s1256_s19, %s498_s19   ;;  %v1013_v62 = vphi %v1254_v62, %v1397_v62  }
 0x3ab   : > { %530 = vmatpush.msra.mxu0 %v507_v63  ;;  %513 = vrot.lane.b32.xlu0 %v1013_v62, %s1030_s5  ;;  %v504_v3 = vld [vmem:[#allocation11] sm:$0xff]  ;;  %s500_s2 = ssub.s32 15, %s1017_s19  ;;  %s498_s19 = sadd.s32 1, %s1017_s19  }
 0x3ac   : > { %v854_v5 = vld [vmem:[#allocation13] ss:$0 sm:$0xff]  ;;  %s1268_s21 = sshll.u32 %s500_s2, 1  ;;  %v577_v25 = vstv %s500_s2  ;;  %852 = vset.pattern.permute.xlu2 %v1032_v26  ;;  %853 = vset.pattern.permute.xlu0 %v1032_v26  ;;  %p495_p1 = scmp.ge.s32.totalorder %s498_s19, 16  }
 0x3ad   : > { %531 = vmatpush.msra.mxu0 %v506_v1  ;;  %s502_s6 = scalar_lea.vmem [#allocation3], %s1268_s21  ;;  %vm578_vm14 = vcmp.lt.s32.totalorder %v577_v25, %v1112_v0  ;;  %s590_s22 = scalar_lea.vmem [#allocation5], %s1268_s21  ;;  %v601_v55 = vld [vmem:[#allocation4 + $0x6] sm:$0x3] (%p495_p1)  ;;  %vm711_vm0 = vcmask (%p495_p1), 517120  }
 0x3ae   : > { %v503_v8 = vld [vmem:[%s502_s6] sm:$0x3]  ;;  %v579_v27 = vsel %vm578_vm14, 1, %v1032_v26  ;;  %s1033_s0 = smov (%p495_p1), 32   ;;  %v602_v58 = vld [vmem:[#allocation4 + $0x8] sm:$0x3] (%p495_p1) }
 0x3af   : > { %532 = vmatpush.msra.mxu0 %v505_v2  ;;  %581 = vperm.xlu2 %852, %v579_v27   ;;  %v605_v61 = vld [vmem:[#allocation4 + $0xe] sm:$0x3] (%p495_p1)  ;;  %v599_v1 = vld [vmem:[#allocation4 + $0x2] sm:$0x3] (%p495_p1) }
 0x3b1   : > { %533 = vmatpush.msra.mxu0 %v504_v3 }
 0x409   : > { %v582_v32 = vpop.permute.xlu2 %581 }
 0x40a   : > { %vm583_vm15 = vcmp.eq.s32.totalorder %v582_v32, 1 }
 0x41d   : > { %v514_v4 = vpop.permute.xlu0 %513 }
 0x41e   : > { %775 = vmatmul.msk.f32.vlgmr.msra.gmra.mxu0 %vm409_vm2, %v514_v4  ;;  %v608_v4 = vld [vmem:[#allocation4 + $0x14] sm:$0x3] (%p495_p1) }
 0x49b   : > { %v535_v6 = vpop.f32.mrf.mxu0 }
 0x49c   : > { %v536_v7 = vadd.f32 %v854_v5, %v535_v6 }
 0x49e   : > { %559 = vrot.lane.b32.xlu0 %v536_v7, %s1031_s20  ;;  %v538_v9 = vadd.f32 %v536_v7, %v503_v8 }
 0x4a0   : > { %v776_v10 = vmul.f32 -1.442695, %v538_v9  ;;  %v600_v9 = vld [vmem:[#allocation4 + $0x4] sm:$0x3] (%p495_p1) }
 0x4a2   : > { %855 = vpow2.f32 %v776_v10 }
 0x4a8   : > { %v856_v11 = vpop.eup %855 }
 0x4a9   : > { %v542_v12 = vadd.f32 1.0, %v856_v11 }
 0x4ab   : > { %857 = vrcp.f32 %v542_v12  ;;  %v554_v18 = vand.u32 2147483648, %v542_v12  ;;  %vm548_vm11 = vweird.f32 %v542_v12  ;;  %v552_v19 = vand.u32 2147483647, %v542_v12 }
 0x4ad   : > { %v555_v21 = vor.u32 1.1754944e-38, %v554_v18  ;;  %vm553_vm13 = vcmp.eq.f32.partialorder %v552_v19, 8.507059e+37  ;;  %v604_v18 = vld [vmem:[#allocation4 + $0xc] sm:$0x3] (%p495_p1) }
 0x4b1   : > { %v858_v13 = vpop.eup %857 }
 0x4b2   : > { %v544_v14 = vmul.f32 %v858_v13, %v542_v12  ;;  %vm549_vm10 = vweird.f32 %v858_v13 }
 0x4b3   : > { %vm550_vm12 = vmor %vm548_vm11, %vm549_vm10 }
 0x4b4   : > { %v545_v15 = vsub.f32 1.0, %v544_v14 }
 0x4b6   : > { %v546_v16 = vmul.f32 %v858_v13, %v545_v15 }
 0x4b8   : > { %v547_v17 = vadd.f32 %v858_v13, %v546_v16 }
 0x4ba   : > { %v551_v20 = vsel %vm550_vm12, %v858_v13, %v547_v17  ;;  %v611_v13 = vld [vmem:[#allocation4 + $0x1a] sm:$0x3] (%p495_p1)  ;;  %v603_v17 = vld [vmem:[#allocation4 + $0xa] sm:$0x3] (%p495_p1) }
 0x4bb   : > { %v556_v23 = vsel %vm553_vm13, %v555_v21, %v551_v20 }
 0x4bc   : > { %v569_v31 = vsub.f32 1.0, %v556_v23  ;;  %v575_v34 = vmul.f32 %v1013_v62, %v556_v23 }
 0x510   : > { %v560_v22 = vpop.permute.xlu0 %559 }
 0x511   : > { %v562_v24 = vmul.f32 %v560_v22, %v556_v23  ;;  %v606_v23 = vld [vmem:[#allocation4 + $0x10] sm:$0x3] (%p495_p1) }
 0x513   : > { %564 = vrot.lane.b32.xlu1 %v562_v24, %s1031_s20  ;;  %v607_v24 = vld [vmem:[#allocation4 + $0x12] sm:$0x3] (%p495_p1) }
 0x585   : > { %v565_v28 = vpop.permute.xlu1 %564 }
 0x586   : > { %v567_v29 = vadd.f32 %v565_v28, %v503_v8  ;;  %v598_v8 = vld [vmem:[#allocation4] sm:$0x3] (%p495_p1) }
 0x588   : > { %859 = vtanh.f32 %v567_v29  ;;  %v609_v29 = vld [vmem:[#allocation4 + $0x16] sm:$0x3] (%p495_p1) }
 0x58e   : > { %v860_v30 = vpop.eup %859 }
 0x58f   : > { %571 = vrot.lane.b32.xlu1 %v860_v30, %s1030_s5  ;;  %v610_v30 = vld [vmem:[#allocation4 + $0x18] sm:$0x3] (%p495_p1) }
 0x601   : > { %v572_v33 = vpop.permute.xlu1 %571 }
 0x602   : > { %v574_v35 = vmul.f32 %v572_v33, %v569_v31 }
 0x604   : > { %v576_v36 = vadd.f32 %v575_v34, %v574_v35  ;;  %v612_v35 = vld [vmem:[#allocation4 + $0x1c] sm:$0x3] (%p495_p1) }
 0x606   : > { %v584_v37 = vsel %vm583_vm15, %v576_v36, %v1013_v62   ;;  %v585_v38 = vsel %vm583_vm15, %v576_v36, 0.0  ;;  %v613_v36 = vld [vmem:[#allocation4 + $0x1e] sm:$0x3] (%p495_p1) }
 0x607   : > { %587 = vrot.lane.b32.xlu2 %v585_v38, %s1030_s5  ;;  %v1397_v62 = vmov %v584_v37  ;;  %593 = vrot.lane.b32.xlu0 (%p495_p1), %v584_v37, %s1029_s7 }
 0x65e   :  { %497 = sbr.rel (!%p495_p1) target bundleno = 938 (0x3aa), region = 132 }
 0x661   : > { %v588_v39 = vpop.permute.xlu2 %587 }
 0x662   : > { %591 = vst.msk [vmem:[%s590_s22] sm:$0x3] %vm485_vm9, %v588_v39 }
 0x669   :  { %v615_v40 = vld [vmem:[#allocation5 + $0x2] sm:$0x3]  ;;  %v617_v41 = vld [vmem:[#allocation5 + $0x6] sm:$0x3]  ;;  %v614_v42 = vld [vmem:[#allocation5] sm:$0x3] }
 0x66a   :  { %648 = vrot.lane.b32.xlu1 %v615_v40, %s1033_s0  ;;  %652 = vrot.lane.b32.xlu2 %v617_v41, %s1033_s0  ;;  %v616_v43 = vld [vmem:[#allocation5 + $0x4] sm:$0x3]  ;;  %v618_v44 = vld [vmem:[#allocation5 + $0x8] sm:$0x3]  ;;  %v619_v45 = vld [vmem:[#allocation5 + $0xa] sm:$0x3] }
 0x66b   :  { %646 = vrot.lane.b32.xlu0 %v614_v42, %s1033_s0  ;;  %v620_v46 = vld [vmem:[#allocation5 + $0xc] sm:$0x3]  ;;  %v621_v0 = vld [vmem:[#allocation5 + $0xe] sm:$0x3]  ;;  %v622_v47 = vld [vmem:[#allocation5 + $0x10] sm:$0x3] }
 0x66c   :  { %v623_v48 = vld [vmem:[#allocation5 + $0x12] sm:$0x3]  ;;  %v624_v49 = vld [vmem:[#allocation5 + $0x14] sm:$0x3]  ;;  %v625_v50 = vld [vmem:[#allocation5 + $0x16] sm:$0x3] }
 0x66d   :  { %v626_v51 = vld [vmem:[#allocation5 + $0x18] sm:$0x3]  ;;  %v627_v52 = vld [vmem:[#allocation5 + $0x1a] sm:$0x3]  ;;  %v628_v53 = vld [vmem:[#allocation5 + $0x1c] sm:$0x3] }
 0x66e   :  { %v629_v54 = vld [vmem:[#allocation5 + $0x1e] sm:$0x3] }
 0x672   :  { %650 = vrot.lane.b32.xlu1 %v616_v43, %s1033_s0  ;;  %654 = vrot.lane.b32.xlu2 %v618_v44, %s1033_s0 }
 0x673   :  { %656 = vrot.lane.b32.xlu0 %v619_v45, %s1033_s0 }
 0x679   :  { %v594_v2 = vpop.permute.xlu0 %593 }
 0x67a   :  { %658 = vrot.lane.b32.xlu1 %v620_v46, %s1033_s0  ;;  %660 = vrot.lane.b32.xlu2 %v621_v0, %s1033_s0  ;;  %777 = vst.msk [vmem:[%s1395_s11 + $0x2] sm:$0x3] %vm485_vm9, %v594_v2 }
 0x67b   :  { %662 = vrot.lane.b32.xlu0 %v622_v47, %s1033_s0 }
 0x682   :  { %664 = vrot.lane.b32.xlu1 %v623_v48, %s1033_s0  ;;  %666 = vrot.lane.b32.xlu2 %v624_v49, %s1033_s0 }
 0x683   :  { %668 = vrot.lane.b32.xlu0 %v625_v50, %s1033_s0 }
 0x68a   :  { %670 = vrot.lane.b32.xlu1 %v626_v51, %s1033_s0  ;;  %672 = vrot.lane.b32.xlu2 %v627_v52, %s1033_s0 }
 0x68b   :  { %674 = vrot.lane.b32.xlu0 %v628_v53, %s1033_s0 }
 0x692   :  { %676 = vrot.lane.b32.xlu1 %v629_v54, %s1033_s0 }
 0x6c4   :  { %v653_v56 = vpop.permute.xlu2 %652 }
 0x6c5   :  { %v698_v57 = vsel %vm409_vm2, %v601_v55, %v653_v56 }
 0x6c6   :  { %715 = vst.msk [vmem:[%s1394_s10 + $0x6] sm:$0x3] %vm711_vm0, %v698_v57 }
 0x6cc   :  { %v655_v59 = vpop.permute.xlu2 %654 }
 0x6cd   :  { %v699_v60 = vsel %vm409_vm2, %v602_v58, %v655_v59 }
 0x6ce   :  { %716 = vst.msk [vmem:[%s1394_s10 + $0x8] sm:$0x3] %vm711_vm0, %v699_v60 }
 0x6d4   :  { %v661_v62 = vpop.permute.xlu2 %660 }
 0x6d5   :  { %v702_v63 = vsel %vm409_vm2, %v605_v61, %v661_v62 }
 0x6d6   :  { %719 = vst.msk [vmem:[%s1394_s10 + $0xe] sm:$0x3] %vm711_vm0, %v702_v63 }
 0x6dc   :  { %v649_v3 = vpop.permute.xlu1 %648  ;;  %v667_v6 = vpop.permute.xlu2 %666 }
 0x6dd   :  { %v696_v5 = vsel %vm409_vm2, %v599_v1, %v649_v3  ;;  %v705_v7 = vsel %vm409_vm2, %v608_v4, %v667_v6  ;;  %v647_v10 = vpop.permute.xlu0 %646 }
 0x6de   :  { %713 = vst.msk [vmem:[%s1394_s10 + $0x2] sm:$0x3] %vm711_vm0, %v696_v5  ;;  %v695_v12 = vsel %vm409_vm2, %v598_v8, %v647_v10 }
 0x6df   :  { %722 = vst.msk [vmem:[%s1394_s10 + $0x14] sm:$0x3] %vm711_vm0, %v705_v7 }
 0x6e0   :  { %712 = vst.msk [vmem:[%s1394_s10] sm:$0x3] %vm711_vm0, %v695_v12 }
 0x6e4   :  { %v651_v11 = vpop.permute.xlu1 %650  ;;  %v673_v15 = vpop.permute.xlu2 %672 }
 0x6e5   :  { %v697_v14 = vsel %vm409_vm2, %v600_v9, %v651_v11  ;;  %v708_v16 = vsel %vm409_vm2, %v611_v13, %v673_v15  ;;  %v657_v19 = vpop.permute.xlu0 %656 }
 0x6e6   :  { %714 = vst.msk [vmem:[%s1394_s10 + $0x4] sm:$0x3] %vm711_vm0, %v697_v14  ;;  %v700_v21 = vsel %vm409_vm2, %v603_v17, %v657_v19 }
 0x6e7   :  { %725 = vst.msk [vmem:[%s1394_s10 + $0x1a] sm:$0x3] %vm711_vm0, %v708_v16 }
 0x6e8   :  { %717 = vst.msk [vmem:[%s1394_s10 + $0xa] sm:$0x3] %vm711_vm0, %v700_v21 }
 0x6ec   :  { %v659_v20 = vpop.permute.xlu1 %658 }
 0x6ed   :  { %v701_v22 = vsel %vm409_vm2, %v604_v18, %v659_v20  ;;  %v663_v25 = vpop.permute.xlu0 %662 }
 0x6ee   :  { %718 = vst.msk [vmem:[%s1394_s10 + $0xc] sm:$0x3] %vm711_vm0, %v701_v22  ;;  %v703_v27 = vsel %vm409_vm2, %v606_v23, %v663_v25 }
 0x6ef   :  { %720 = vst.msk [vmem:[%s1394_s10 + $0x10] sm:$0x3] %vm711_vm0, %v703_v27 }
 0x6f4   :  { %v665_v26 = vpop.permute.xlu1 %664 }
 0x6f5   :  { %v704_v28 = vsel %vm409_vm2, %v607_v24, %v665_v26  ;;  %v669_v31 = vpop.permute.xlu0 %668 }
 0x6f6   :  { %721 = vst.msk [vmem:[%s1394_s10 + $0x12] sm:$0x3] %vm711_vm0, %v704_v28  ;;  %v706_v33 = vsel %vm409_vm2, %v609_v29, %v669_v31 }
 0x6f7   :  { %723 = vst.msk [vmem:[%s1394_s10 + $0x16] sm:$0x3] %vm711_vm0, %v706_v33 }
 0x6fc   :  { %v671_v32 = vpop.permute.xlu1 %670 }
 0x6fd   :  { %v707_v34 = vsel %vm409_vm2, %v610_v30, %v671_v32  ;;  %v675_v37 = vpop.permute.xlu0 %674 }
 0x6fe   :  { %724 = vst.msk [vmem:[%s1394_s10 + $0x18] sm:$0x3] %vm711_vm0, %v707_v34  ;;  %v709_v39 = vsel %vm409_vm2, %v612_v35, %v675_v37 }
 0x6ff   :  { %726 = vst.msk [vmem:[%s1394_s10 + $0x1c] sm:$0x3] %vm711_vm0, %v709_v39 }
 0x704   :  { %v677_v38 = vpop.permute.xlu1 %676 }
 0x705   :  { %v710_v40 = vsel %vm409_vm2, %v613_v36, %v677_v38 }
 0x706   :  { %727 = vst.msk [vmem:[%s1394_s10 + $0x1e] sm:$0x3] %vm711_vm0, %v710_v40 }
 0x707   :  { %736 = vsyncpa [#allocation7], 1 }
 0x708   :  { %737 = vsyncpa [#allocation9], 1 }
 0x709   :  { %738 = vsyncpa [#allocation12], 1 }

// kernel: encoder_forward.2
= control target key start
LH: loop header
LB: loop body
LE: loop exit
PB: predicated region body
PF: predicated region fallthrough
CT: control target
= control target key end

     0   :  { %17 = vsyncpa [#allocation7], 0  ;;  %s825_s20 = smov [#allocation6]   ;;  %s826_s22 = smov 128   ;;  %s1187_s0 = inlined_call_operand.vmem [shape: s32[2,1], index: 0, kind: input, shape index: {}]   ;;  %s1188_s1 = inlined_call_operand.vmem [shape: f32[16,2,8], index: 1, kind: input, shape index: {}]   ;;  %s1189_s2 = inlined_call_operand.vmem [shape: f32[8,96], index: 2, kind: input, shape index: {}]   ;;  %s1190_s3 = inlined_call_operand.vmem [shape: f32[32,96], index: 3, kind: input, shape index: {}]   ;;  %s1191_s4 = inlined_call_operand.vmem [shape: f32[1,96], index: 4, kind: input, shape index: {}]   ;;  %s1192_s5 = inlined_call_operand.vmem [shape: f32[1,96], index: 5, kind: input, shape index: {}]   ;;  %s1193_s6 = inlined_call_operand.vmem [shape: f32[8,96], index: 6, kind: input, shape index: {}]   ;;  %s1194_s7 = inlined_call_operand.hbm [shape: f32[32,96], index: 7, kind: input, shape index: {}]   ;;  %s1195_s8 = inlined_call_operand.vmem [shape: f32[1,96], index: 8, kind: input, shape index: {}]   ;;  %s1196_s9 = inlined_call_operand.vmem [shape: f32[1,96], index: 9, kind: input, shape index: {}]   ;;  %s1197_s10 = inlined_call_operand.vmem [shape: f32[16,2,64], index: 10, kind: output, shape index: {0}]   ;;  %s1198_s11 = inlined_call_operand.vmem [shape: f32[2,2,32], index: 11, kind: output, shape index: {1}]  }
   0x1   :  { %s36_s19 = sshll.u32 %s1194_s7, 4  ;;  %s38_s21 = sshll.u32 %s825_s20, 4  ;;  %s37_s19 = int_to_ptr.hbm [resolvable:$true] %s36_s19  ;;  %s39_s21 = int_to_ptr.vmem [resolvable:$true] %s38_s21 }
   0x2   :  { %s827_s23 = smov 8  }
   0x3   :  { %44 = dma.hbm_to_vmem [thread:$0]  %s37_s19, 512, %s39_s21, [#allocation7], %s826_s22, %s826_s22, %s827_s23  }
   0x4   :  { %807 = dma.done.wait [#allocation7], 512  }
   0x5   :  { %808 = vsyncadd [#allocation7], 4294966784  ;;  %v902_v0 = vld [vmem:[%s1187_s0] sm:$0x3]  ;;  %v54_v4 = vld [vmem:[%s1188_s1 + $0x2] sm:$0x3] }
   0x6   :  { %v69_v1 = vld [vmem:[%s1189_s2] sm:$0xff]  ;;  %92 = vst [vmem:[#allocation1 + $0x1] ss:$4 sm:$0xff] %v54_v4  ;;  %v57_v7 = vld [vmem:[%s1188_s1 + $0x8] sm:$0x3]  ;;  %vm117_vm0 = vcmask 64512  }
   0x7   :  { %v200_v2 = vld [vmem:[%s1193_s6] sm:$0xff]  ;;  %702 = vmatpush.msra.mxu2 %v69_v1  ;;  %141 = vmatpush.msra.mxu0 %v69_v1  ;;  %v58_v8 = vld [vmem:[%s1188_s1 + $0xa] sm:$0x3]  ;;  %v59_v9 = vld [vmem:[%s1188_s1 + $0xc] sm:$0x3]  ;;  %vm183_vm1 = vcmask 779264  }
   0x8   :  { %703 = vmatpush.msra.mxu3 %v200_v2  ;;  %v53_v3 = vld [vmem:[%s1188_s1] sm:$0x3]  ;;  %v55_v5 = vld [vmem:[%s1188_s1 + $0x4] sm:$0x3]  ;;  %255 = vmatpush.msra.mxu1 %v200_v2  ;;  %v56_v6 = vld [vmem:[%s1188_s1 + $0x6] sm:$0x3] }
   0x9   :  { %90 = vst [vmem:[#allocation1] ss:$4 sm:$0xff] %v53_v3  ;;  %v60_v10 = vld [vmem:[%s1188_s1 + $0xe] sm:$0x3]  ;;  %v61_v11 = vld [vmem:[%s1188_s1 + $0x10] sm:$0x3] }
   0xa   :  { %94 = vst [vmem:[#allocation1 + $0x2] ss:$4 sm:$0xff] %v55_v5  ;;  %v62_v12 = vld [vmem:[%s1188_s1 + $0x12] sm:$0x3]  ;;  %v63_v13 = vld [vmem:[%s1188_s1 + $0x14] sm:$0x3] }
   0xb   :  { %96 = vst [vmem:[#allocation1 + $0x3] ss:$4 sm:$0xff] %v56_v6  ;;  %v64_v15 = vld [vmem:[%s1188_s1 + $0x16] sm:$0x3]  ;;  %v65_v16 = vld [vmem:[%s1188_s1 + $0x18] sm:$0x3] }
   0xc   :  { %98 = vst [vmem:[#allocation1 + $0x20] ss:$4 sm:$0xff] %v57_v7  ;;  %v66_v17 = vld [vmem:[%s1188_s1 + $0x1a] sm:$0x3]  ;;  %v67_v18 = vld [vmem:[%s1188_s1 + $0x1c] sm:$0x3] }
   0xd   :  { %100 = vst [vmem:[#allocation1 + $0x21] ss:$4 sm:$0xff] %v58_v8  ;;  %v68_v20 = vld [vmem:[%s1188_s1 + $0x1e] sm:$0x3]  ;;  %v747_v27 = vld [vmem:[%s1191_s4] ss:$0 sm:$0xff] }
   0xe   :  { %102 = vst [vmem:[#allocation1 + $0x22] ss:$4 sm:$0xff] %v59_v9  ;;  %v748_v39 = vld [vmem:[%s1195_s8] ss:$0 sm:$0xff]  ;;  %s1006_s8 = smov 0  }
   0xf   :  { %104 = vst [vmem:[#allocation1 + $0x23] ss:$4 sm:$0xff] %v60_v10 }
  0x12   :  { %v105_v14 = vld.sshfl [vmem:[#allocation1] sm:$0xff pattern:$0x73625140] }
  0x13   :  { %107 = vst [vmem:[#allocation1] ss:$4 sm:$0xff] %v61_v11  ;;  %687 = vmatmul.msk.f32.vlgmr.msra.gmra.mxu0 %vm117_vm0, %v105_v14 }
  0x14   :  { %108 = vst [vmem:[#allocation1 + $0x1] ss:$4 sm:$0xff] %v62_v12 }
  0x15   :  { %109 = vst [vmem:[#allocation1 + $0x2] ss:$4 sm:$0xff] %v63_v13 }
  0x16   :  { %110 = vst [vmem:[#allocation1 + $0x3] ss:$4 sm:$0xff] %v64_v15  ;;  %v106_v19 = vld.sshfl [vmem:[#allocation1 + $0x20] sm:$0xff pattern:$0x73625140] }
  0x17   :  { %111 = vst [vmem:[#allocation1 + $0x20] ss:$4 sm:$0xff] %v65_v16 }
  0x18   :  { %112 = vst [vmem:[#allocation1 + $0x21] ss:$4 sm:$0xff] %v66_v17 }
  0x19   :  { %113 = vst [vmem:[#allocation1 + $0x22] ss:$4 sm:$0xff] %v67_v18 }
  0x1a   :  { %114 = vst [vmem:[#allocation1 + $0x23] ss:$4 sm:$0xff] %v68_v20 }
  0x1b   :  { %688 = vmatmul.msk.f32.gmra.mxu0 %vm117_vm0, %v106_v19 }
  0x1d   :  { %v115_v21 = vld.sshfl [vmem:[#allocation1] sm:$0xff pattern:$0x73625140] }
  0x1e   :  { %689 = vmatmul.msk.f32.vlgmr.msra.gmra.mxu2 %vm117_vm0, %v115_v21  ;;  %205 = vst [vmem:[#allocation1] ss:$4 sm:$0xff] %v53_v3 }
  0x1f   :  { %207 = vst [vmem:[#allocation1 + $0x1] ss:$4 sm:$0xff] %v54_v4 }
  0x20   :  { %209 = vst [vmem:[#allocation1 + $0x2] ss:$4 sm:$0xff] %v55_v5 }
  0x21   :  { %211 = vst [vmem:[#allocation1 + $0x3] ss:$4 sm:$0xff] %v56_v6  ;;  %v116_v22 = vld.sshfl [vmem:[#allocation1 + $0x20] sm:$0xff pattern:$0x73625140]  ;;  %v1004_v6 = vmov 0.0  }
  0x22   :  { %213 = vst [vmem:[#allocation1 + $0x20] ss:$4 sm:$0xff] %v57_v7 }
  0x23   :  { %215 = vst [vmem:[#allocation1 + $0x21] ss:$4 sm:$0xff] %v58_v8 }
  0x24   :  { %217 = vst [vmem:[#allocation1 + $0x22] ss:$4 sm:$0xff] %v59_v9 }
  0x25   :  { %219 = vst [vmem:[#allocation1 + $0x23] ss:$4 sm:$0xff] %v60_v10 }
  0x26   :  { %690 = vmatmul.msk.f32.gmra.mxu2 %vm117_vm0, %v116_v22 }
  0x28   :  { %v220_v23 = vld.sshfl [vmem:[#allocation1] sm:$0xff pattern:$0x73625140] }
  0x29   :  { %222 = vst [vmem:[#allocation1] ss:$4 sm:$0xff] %v61_v11  ;;  %691 = vmatmul.msk.f32.vlgmr.msra.gmra.mxu1 %vm117_vm0, %v220_v23 }
  0x2a   :  { %223 = vst [vmem:[#allocation1 + $0x1] ss:$4 sm:$0xff] %v62_v12 }
  0x2b   :  { %224 = vst [vmem:[#allocation1 + $0x2] ss:$4 sm:$0xff] %v63_v13 }
  0x2c   :  { %225 = vst [vmem:[#allocation1 + $0x3] ss:$4 sm:$0xff] %v64_v15  ;;  %v221_v24 = vld.sshfl [vmem:[#allocation1 + $0x20] sm:$0xff pattern:$0x73625140] }
  0x2d   :  { %226 = vst [vmem:[#allocation1 + $0x20] ss:$4 sm:$0xff] %v65_v16 }
  0x2e   :  { %227 = vst [vmem:[#allocation1 + $0x21] ss:$4 sm:$0xff] %v66_v17 }
  0x2f   :  { %228 = vst [vmem:[#allocation1 + $0x22] ss:$4 sm:$0xff] %v67_v18 }
  0x30   :  { %229 = vst [vmem:[#allocation1 + $0x23] ss:$4 sm:$0xff] %v68_v20 }
  0x31   :  { %692 = vmatmul.msk.f32.gmra.mxu1 %vm117_vm0, %v221_v24 }
  0x33   :  { %v230_v25 = vld.sshfl [vmem:[#allocation1] sm:$0xff pattern:$0x73625140] }
  0x34   :  { %693 = vmatmul.msk.f32.vlgmr.msra.gmra.mxu3 %vm117_vm0, %v230_v25 }
  0x37   :  { %v231_v26 = vld.sshfl [vmem:[#allocation1 + $0x20] sm:$0xff pattern:$0x73625140] }
  0x3c   :  { %694 = vmatmul.msk.f32.gmra.mxu3 %vm117_vm0, %v231_v26 }
  0x90   :  { %v143_v28 = vpop.f32.mrf.mxu0 }
  0x91   :  { %v144_v29 = vadd.f32 %v747_v27, %v143_v28 }
  0x93   :  { %v159_v30 = vrot.slane %v144_v29, 2  ;;  %v160_v31 = vrot.slane %v144_v29, 4  ;;  %v161_v32 = vrot.slane %v144_v29, 6  ;;  %184 = vst.msk [vmem:[#allocation2] sm:$0x3] %vm183_vm1, %v144_v29 }
  0x95   :  { %185 = vst.msk [vmem:[#allocation2 + $0x2] sm:$0x3] %vm183_vm1, %v159_v30 }
  0x96   :  { %186 = vst.msk [vmem:[#allocation2 + $0x4] sm:$0x3] %vm183_vm1, %v160_v31 }
  0x97   :  { %187 = vst.msk [vmem:[#allocation2 + $0x6] sm:$0x3] %vm183_vm1, %v161_v32 }
  0x98   :  { %v146_v33 = vpop.f32.mrf.mxu0 }
  0x99   :  { %v147_v34 = vadd.f32 %v747_v27, %v146_v33 }
  0x9b   :  { %v162_v36 = vrot.slane %v147_v34, 2  ;;  %v163_v37 = vrot.slane %v147_v34, 4  ;;  %188 = vst.msk [vmem:[#allocation2 + $0x8] sm:$0x3] %vm183_vm1, %v147_v34  ;;  %v164_v44 = vrot.slane %v147_v34, 6 }
  0x9d   :  { %189 = vst.msk [vmem:[#allocation2 + $0xa] sm:$0x3] %vm183_vm1, %v162_v36 }
  0x9e   :  { %190 = vst.msk [vmem:[#allocation2 + $0xc] sm:$0x3] %vm183_vm1, %v163_v37 }
  0x9f   :  { %191 = vst.msk [vmem:[#allocation2 + $0xe] sm:$0x3] %vm183_vm1, %v164_v44 }
  0xa1   :  { %v149_v35 = vpop.f32.mrf.mxu2 }
  0xa2   :  { %v150_v38 = vadd.f32 %v747_v27, %v149_v35 }
  0xa4   :  { %v165_v40 = vrot.slane %v150_v38, 2  ;;  %v166_v41 = vrot.slane %v150_v38, 4  ;;  %v167_v42 = vrot.slane %v150_v38, 6  ;;  %192 = vst.msk [vmem:[#allocation2 + $0x10] sm:$0x3] %vm183_vm1, %v150_v38 }
  0xa6   :  { %193 = vst.msk [vmem:[#allocation2 + $0x12] sm:$0x3] %vm183_vm1, %v165_v40  ;;  %v257_v43 = vpop.f32.mrf.mxu1 }
  0xa7   :  { %194 = vst.msk [vmem:[#allocation2 + $0x14] sm:$0x3] %vm183_vm1, %v166_v41  ;;  %v258_v45 = vadd.f32 %v748_v39, %v257_v43 }
  0xa8   :  { %195 = vst.msk [vmem:[#allocation2 + $0x16] sm:$0x3] %vm183_vm1, %v167_v42 }
  0xa9   :  { %v273_v46 = vrot.slane %v258_v45, 2  ;;  %v274_v47 = vrot.slane %v258_v45, 4  ;;  %v275_v48 = vrot.slane %v258_v45, 6  ;;  %297 = vst.msk [vmem:[#allocation3] sm:$0x3] %vm183_vm1, %v258_v45  ;;  %v152_v49 = vpop.f32.mrf.mxu2 }
  0xaa   :  { %v153_v50 = vadd.f32 %v747_v27, %v152_v49 }
  0xab   :  { %298 = vst.msk [vmem:[#allocation3 + $0x2] sm:$0x3] %vm183_vm1, %v273_v46 }
  0xac   :  { %299 = vst.msk [vmem:[#allocation3 + $0x4] sm:$0x3] %vm183_vm1, %v274_v47  ;;  %v168_v51 = vrot.slane %v153_v50, 2  ;;  %v169_v52 = vrot.slane %v153_v50, 4  ;;  %v170_v53 = vrot.slane %v153_v50, 6 }
  0xad   :  { %300 = vst.msk [vmem:[#allocation3 + $0x6] sm:$0x3] %vm183_vm1, %v275_v48 }
  0xae   :  { %196 = vst.msk [vmem:[#allocation2 + $0x18] sm:$0x3] %vm183_vm1, %v153_v50  ;;  %v260_v54 = vpop.f32.mrf.mxu1 }
  0xaf   :  { %197 = vst.msk [vmem:[#allocation2 + $0x1a] sm:$0x3] %vm183_vm1, %v168_v51  ;;  %v261_v55 = vadd.f32 %v748_v39, %v260_v54 }
  0xb0   :  { %198 = vst.msk [vmem:[#allocation2 + $0x1c] sm:$0x3] %vm183_vm1, %v169_v52 }
  0xb1   :  { %199 = vst.msk [vmem:[#allocation2 + $0x1e] sm:$0x3] %vm183_vm1, %v170_v53  ;;  %v276_v56 = vrot.slane %v261_v55, 2  ;;  %v277_v57 = vrot.slane %v261_v55, 4  ;;  %v278_v58 = vrot.slane %v261_v55, 6 }
  0xb2   :  { %301 = vst.msk [vmem:[#allocation3 + $0x8] sm:$0x3] %vm183_vm1, %v261_v55 }
  0xb3   :  { %302 = vst.msk [vmem:[#allocation3 + $0xa] sm:$0x3] %vm183_vm1, %v276_v56 }
  0xb4   :  { %303 = vst.msk [vmem:[#allocation3 + $0xc] sm:$0x3] %vm183_vm1, %v277_v57 }
  0xb5   :  { %304 = vst.msk [vmem:[#allocation3 + $0xe] sm:$0x3] %vm183_vm1, %v278_v58 }
  0xb7   :  { %v263_v59 = vpop.f32.mrf.mxu3 }
  0xb8   :  { %v264_v60 = vadd.f32 %v748_v39, %v263_v59 }
  0xba   :  { %v279_v61 = vrot.slane %v264_v60, 2  ;;  %v280_v62 = vrot.slane %v264_v60, 4  ;;  %v281_v63 = vrot.slane %v264_v60, 6  ;;  %305 = vst.msk [vmem:[#allocation3 + $0x10] sm:$0x3] %vm183_vm1, %v264_v60 }
  0xbc   :  { %306 = vst.msk [vmem:[#allocation3 + $0x12] sm:$0x3] %vm183_vm1, %v279_v61 }
  0xbd   :  { %307 = vst.msk [vmem:[#allocation3 + $0x14] sm:$0x3] %vm183_vm1, %v280_v62 }
  0xbe   :  { %308 = vst.msk [vmem:[#allocation3 + $0x16] sm:$0x3] %vm183_vm1, %v281_v63 }
  0xbf   :  { %v266_v1 = vpop.f32.mrf.mxu3 }
  0xc0   :  { %v267_v2 = vadd.f32 %v748_v39, %v266_v1 }
  0xc2   :  { %v282_v3 = vrot.slane %v267_v2, 2  ;;  %v283_v4 = vrot.slane %v267_v2, 4  ;;  %v284_v5 = vrot.slane %v267_v2, 6  ;;  %309 = vst.msk [vmem:[#allocation3 + $0x18] sm:$0x3] %vm183_vm1, %v267_v2 }
  0xc4   :  { %310 = vst.msk [vmem:[#allocation3 + $0x1a] sm:$0x3] %vm183_vm1, %v282_v3 }
  0xc5   :  { %311 = vst.msk [vmem:[#allocation3 + $0x1c] sm:$0x3] %vm183_vm1, %v283_v4 }
  0xc6   :  { %312 = vst.msk [vmem:[#allocation3 + $0x1e] sm:$0x3] %vm183_vm1, %v284_v5 }
  0xc7 LB: > { %v327_v7 = vld [vmem:[%s1190_s3 + $0x18] sm:$0xff]  ;;  %v326_v8 = vld [vmem:[%s1190_s3 + $0x10] sm:$0xff]  ;;  %s828_s22 = smov 96   ;;  %v325_v9 = vld [vmem:[%s1190_s3 + $0x8] sm:$0xff]  ;;  %vm335_vm2 = vcmask 261120   ;;  %s829_s7 = smov 64   ;;  %v397_v32 = vstv %s815_s8  ;;  %s815_s8 = sphi %s1006_s8, %s319_s8   ;;  %v811_v6 = vphi %v1004_v6, %v1199_v6  }
  0xc8   : > { %350 = vmatpush.msra.mxu0 %v327_v7  ;;  %333 = vrot.lane.b32.xlu0 %v811_v6, %s828_s22  ;;  %v324_v10 = vld [vmem:[%s1190_s3] sm:$0xff]  ;;  %s695_s29 = sshll.u32 %s815_s8, 1  ;;  %v830_v33 = vmov 0   ;;  %vm398_vm7 = vcmp.lt.s32.totalorder %v397_v32, %v902_v0  ;;  %vm411_vm9 = vcmask 254976   ;;  %s319_s8 = sadd.s32 1, %s815_s8  }
  0xc9   : > { %v751_v12 = vld [vmem:[%s1192_s5] ss:$0 sm:$0xff]  ;;  %s322_s30 = scalar_lea.vmem [#allocation2], %s695_s29  ;;  %749 = vset.pattern.permute.xlu2 %v830_v33  ;;  %750 = vset.pattern.permute.xlu0 %v830_v33  ;;  %v399_v34 = vsel %vm398_vm7, 1, %v830_v33  ;;  %s410_s12 = scalar_lea.vmem [#allocation4], %s695_s29 }
  0xca   : > { %351 = vmatpush.msra.mxu0 %v326_v8  ;;  %v323_v15 = vld [vmem:[%s322_s30] sm:$0x3]  ;;  %401 = vperm.xlu2 %749, %v399_v34   ;;  %p316_p0 = scmp.ge.s32.totalorder %s319_s8, 16  }
  0xcb   :  { %s831_s13 = smov (%p316_p0), 96   ;;  %v1054_v48 = vmov (%p316_p0), 0.0   ;;  %s1056_s2 = smov (%p316_p0), 0  }
  0xcc   : > { %352 = vmatpush.msra.mxu0 %v325_v9 }
  0xce   : > { %353 = vmatpush.msra.mxu0 %v324_v10 }
 0x124   : > { %v402_v39 = vpop.permute.xlu2 %401 }
 0x125   : > { %vm403_vm8 = vcmp.eq.s32.totalorder %v402_v39, 1 }
 0x13a   : > { %v334_v11 = vpop.permute.xlu0 %333 }
 0x13b   : > { %696 = vmatmul.msk.f32.vlgmr.msra.gmra.mxu0 %vm335_vm2, %v334_v11 }
 0x1b8   : > { %v355_v13 = vpop.f32.mrf.mxu0 }
 0x1b9   : > { %v356_v14 = vadd.f32 %v751_v12, %v355_v13 }
 0x1bb   : > { %379 = vrot.lane.b32.xlu0 %v356_v14, %s829_s7  ;;  %v358_v16 = vadd.f32 %v356_v14, %v323_v15 }
 0x1bd   : > { %v697_v17 = vmul.f32 -1.442695, %v358_v16 }
 0x1bf   : > { %752 = vpow2.f32 %v697_v17 }
 0x1c5   : > { %v753_v18 = vpop.eup %752 }
 0x1c6   : > { %v362_v19 = vadd.f32 1.0, %v753_v18 }
 0x1c8   : > { %754 = vrcp.f32 %v362_v19  ;;  %v374_v25 = vand.u32 2147483648, %v362_v19  ;;  %vm368_vm4 = vweird.f32 %v362_v19  ;;  %v372_v26 = vand.u32 2147483647, %v362_v19 }
 0x1ca   : > { %v375_v28 = vor.u32 1.1754944e-38, %v374_v25  ;;  %vm373_vm6 = vcmp.eq.f32.partialorder %v372_v26, 8.507059e+37 }
 0x1ce   : > { %v755_v20 = vpop.eup %754 }
 0x1cf   : > { %v364_v21 = vmul.f32 %v755_v20, %v362_v19  ;;  %vm369_vm3 = vweird.f32 %v755_v20 }
 0x1d0   : > { %vm370_vm5 = vmor %vm368_vm4, %vm369_vm3 }
 0x1d1   : > { %v365_v22 = vsub.f32 1.0, %v364_v21 }
 0x1d3   : > { %v366_v23 = vmul.f32 %v755_v20, %v365_v22 }
 0x1d5   : > { %v367_v24 = vadd.f32 %v755_v20, %v366_v23 }
 0x1d7   : > { %v371_v27 = vsel %vm370_vm5, %v755_v20, %v367_v24 }
 0x1d8   : > { %v376_v30 = vsel %vm373_vm6, %v375_v28, %v371_v27 }
 0x1d9   : > { %v389_v38 = vsub.f32 1.0, %v376_v30  ;;  %v395_v41 = vmul.f32 %v811_v6, %v376_v30 }
 0x22d   : > { %v380_v29 = vpop.permute.xlu0 %379 }
 0x22e   : > { %v382_v31 = vmul.f32 %v380_v29, %v376_v30 }
 0x230   : > { %384 = vrot.lane.b32.xlu1 %v382_v31, %s829_s7 }
 0x2a2   : > { %v385_v35 = vpop.permute.xlu1 %384 }
 0x2a3   : > { %v387_v36 = vadd.f32 %v385_v35, %v323_v15 }
 0x2a5   : > { %756 = vtanh.f32 %v387_v36 }
 0x2ab   : > { %v757_v37 = vpop.eup %756 }
 0x2ac   : > { %391 = vrot.lane.b32.xlu1 %v757_v37, %s828_s22 }
 0x31e   : > { %v392_v40 = vpop.permute.xlu1 %391 }
 0x31f   : > { %v394_v42 = vmul.f32 %v392_v40, %v389_v38 }
 0x321   : > { %v396_v43 = vadd.f32 %v395_v41, %v394_v42 }
 0x323   : > { %v404_v44 = vsel %vm403_vm8, %v396_v43, %v811_v6   ;;  %v405_v45 = vsel %vm403_vm8, %v396_v43, 0.0 }
 0x324   : > { %407 = vrot.lane.b32.xlu2 %v405_v45, %s828_s22  ;;  %v1199_v6 = vmov %v404_v44  ;;  %414 = vrot.lane.b32.xlu0 (%p316_p0), %v404_v44, %s831_s13 }
 0x37b   :  { %318 = sbr.rel (!%p316_p0) target bundleno = 199 (0xc7), region = 105 }
 0x37e   : > { %v408_v46 = vpop.permute.xlu2 %407 }
 0x37f   : > { %412 = vst.msk [vmem:[%s410_s12] sm:$0x3] %vm411_vm9, %v408_v46 }
 0x396   :  { %v415_v47 = vpop.permute.xlu0 %414 }
 0x397   :  { %418 = vst.msk [vmem:[%s1198_s11] sm:$0x3] %vm411_vm9, %v415_v47 }
 0x398 LB: > { %v433_v49 = vld [vmem:[#allocation6 + $0x18] sm:$0xff]  ;;  %v432_v50 = vld [vmem:[#allocation6 + $0x10] sm:$0xff]  ;;  %s832_s3 = smov 96   ;;  %v431_v51 = vld [vmem:[#allocation6 + $0x8] sm:$0xff]  ;;  %s833_s6 = smov 64   ;;  %v834_v12 = vmov 0   ;;  %s823_s2 = sphi %s1056_s2, %s424_s2   ;;  %v819_v48 = vphi %v1054_v48, %v1200_v48  }
 0x399   : > { %456 = vmatpush.msra.mxu0 %v433_v49  ;;  %439 = vrot.lane.b32.xlu0 %v819_v48, %s832_s3  ;;  %v430_v52 = vld [vmem:[#allocation6] sm:$0xff]  ;;  %v760_v54 = vld [vmem:[%s1196_s9] ss:$0 sm:$0xff]  ;;  %s426_s1 = ssub.s32 15, %s823_s2  ;;  %s424_s2 = sadd.s32 1, %s823_s2  }
 0x39a   : > { %s1071_s16 = sshll.u32 %s426_s1, 1  ;;  %v503_v11 = vstv %s426_s1  ;;  %758 = vset.pattern.permute.xlu2 %v834_v12  ;;  %759 = vset.pattern.permute.xlu0 %v834_v12  ;;  %p421_p1 = scmp.ge.s32.totalorder %s424_s2, 16  }
 0x39b   : > { %457 = vmatpush.msra.mxu0 %v432_v50  ;;  %s428_s4 = scalar_lea.vmem [#allocation3], %s1071_s16  ;;  %vm504_vm14 = vcmp.lt.s32.totalorder %v503_v11, %v902_v0  ;;  %s516_s17 = scalar_lea.vmem [#allocation5], %s1071_s16  ;;  %v527_v41 = vld [vmem:[#allocation4 + $0x6] sm:$0x3] (%p421_p1)  ;;  %vm637_vm0 = vcmask (%p421_p1), 517120  }
 0x39c   : > { %v429_v57 = vld [vmem:[%s428_s4] sm:$0x3]  ;;  %v505_v13 = vsel %vm504_vm14, 1, %v834_v12  ;;  %s835_s8 = smov (%p421_p1), 32   ;;  %v528_v44 = vld [vmem:[#allocation4 + $0x8] sm:$0x3] (%p421_p1) }
 0x39d   : > { %458 = vmatpush.msra.mxu0 %v431_v51  ;;  %507 = vperm.xlu2 %758, %v505_v13   ;;  %v531_v47 = vld [vmem:[#allocation4 + $0xe] sm:$0x3] (%p421_p1)  ;;  %v525_v50 = vld [vmem:[#allocation4 + $0x2] sm:$0x3] (%p421_p1) }
 0x39f   : > { %459 = vmatpush.msra.mxu0 %v430_v52 }
 0x3f7   : > { %v508_v18 = vpop.permute.xlu2 %507 }
 0x3f8   : > { %vm509_vm15 = vcmp.eq.s32.totalorder %v508_v18, 1 }
 0x40b   : > { %v440_v53 = vpop.permute.xlu0 %439 }
 0x40c   : > { %699 = vmatmul.msk.f32.vlgmr.msra.gmra.mxu0 %vm335_vm2, %v440_v53  ;;  %v534_v53 = vld [vmem:[#allocation4 + $0x14] sm:$0x3] (%p421_p1) }
 0x489   : > { %v461_v55 = vpop.f32.mrf.mxu0 }
 0x48a   : > { %v462_v56 = vadd.f32 %v760_v54, %v461_v55 }
 0x48c   : > { %485 = vrot.lane.b32.xlu0 %v462_v56, %s833_s6  ;;  %v464_v58 = vadd.f32 %v462_v56, %v429_v57 }
 0x48e   : > { %v700_v59 = vmul.f32 -1.442695, %v464_v58  ;;  %v526_v58 = vld [vmem:[#allocation4 + $0x4] sm:$0x3] (%p421_p1) }
 0x490   : > { %761 = vpow2.f32 %v700_v59 }
 0x496   : > { %v762_v60 = vpop.eup %761 }
 0x497   : > { %v468_v61 = vadd.f32 1.0, %v762_v60 }
 0x499   : > { %763 = vrcp.f32 %v468_v61  ;;  %v480_v4 = vand.u32 2147483648, %v468_v61  ;;  %vm474_vm11 = vweird.f32 %v468_v61  ;;  %v478_v5 = vand.u32 2147483647, %v468_v61 }
 0x49b   : > { %v481_v7 = vor.u32 1.1754944e-38, %v480_v4  ;;  %vm479_vm13 = vcmp.eq.f32.partialorder %v478_v5, 8.507059e+37  ;;  %v530_v4 = vld [vmem:[#allocation4 + $0xc] sm:$0x3] (%p421_p1) }
 0x49f   : > { %v764_v62 = vpop.eup %763 }
 0x4a0   : > { %v470_v63 = vmul.f32 %v764_v62, %v468_v61  ;;  %vm475_vm10 = vweird.f32 %v764_v62 }
 0x4a1   : > { %vm476_vm12 = vmor %vm474_vm11, %vm475_vm10 }
 0x4a2   : > { %v471_v1 = vsub.f32 1.0, %v470_v63 }
 0x4a4   : > { %v472_v2 = vmul.f32 %v764_v62, %v471_v1 }
 0x4a6   : > { %v473_v3 = vadd.f32 %v764_v62, %v472_v2 }
 0x4a8   : > { %v477_v6 = vsel %vm476_vm12, %v764_v62, %v473_v3  ;;  %v537_v62 = vld [vmem:[#allocation4 + $0x1a] sm:$0x3] (%p421_p1)  ;;  %v529_v3 = vld [vmem:[#allocation4 + $0xa] sm:$0x3] (%p421_p1) }
 0x4a9   : > { %v482_v9 = vsel %vm479_vm13, %v481_v7, %v477_v6 }
 0x4aa   : > { %v495_v17 = vsub.f32 1.0, %v482_v9  ;;  %v501_v20 = vmul.f32 %v819_v48, %v482_v9 }
 0x4fe   : > { %v486_v8 = vpop.permute.xlu0 %485 }
 0x4ff   : > { %v488_v10 = vmul.f32 %v486_v8, %v482_v9  ;;  %v532_v9 = vld [vmem:[#allocation4 + $0x10] sm:$0x3] (%p421_p1) }
 0x501   : > { %490 = vrot.lane.b32.xlu1 %v488_v10, %s833_s6  ;;  %v533_v10 = vld [vmem:[#allocation4 + $0x12] sm:$0x3] (%p421_p1) }
 0x573   : > { %v491_v14 = vpop.permute.xlu1 %490 }
 0x574   : > { %v493_v15 = vadd.f32 %v491_v14, %v429_v57  ;;  %v524_v57 = vld [vmem:[#allocation4] sm:$0x3] (%p421_p1) }
 0x576   : > { %765 = vtanh.f32 %v493_v15  ;;  %v535_v15 = vld [vmem:[#allocation4 + $0x16] sm:$0x3] (%p421_p1) }
 0x57c   : > { %v766_v16 = vpop.eup %765 }
 0x57d   : > { %497 = vrot.lane.b32.xlu1 %v766_v16, %s832_s3  ;;  %v536_v16 = vld [vmem:[#allocation4 + $0x18] sm:$0x3] (%p421_p1) }
 0x5ef   : > { %v498_v19 = vpop.permute.xlu1 %497 }
 0x5f0   : > { %v500_v21 = vmul.f32 %v498_v19, %v495_v17 }
 0x5f2   : > { %v502_v22 = vadd.f32 %v501_v20, %v500_v21  ;;  %v538_v21 = vld [vmem:[#allocation4 + $0x1c] sm:$0x3] (%p421_p1) }
 0x5f4   : > { %v510_v23 = vsel %vm509_vm15, %v502_v22, %v819_v48   ;;  %v511_v24 = vsel %vm509_vm15, %v502_v22, 0.0  ;;  %v539_v22 = vld [vmem:[#allocation4 + $0x1e] sm:$0x3] (%p421_p1) }
 0x5f5   : > { %513 = vrot.lane.b32.xlu2 %v511_v24, %s832_s3  ;;  %v1200_v48 = vmov %v510_v23  ;;  %519 = vrot.lane.b32.xlu0 (%p421_p1), %v510_v23, %s831_s13 }
 0x64c   :  { %423 = sbr.rel (!%p421_p1) target bundleno = 920 (0x398), region = 116 }
 0x64f   : > { %v514_v25 = vpop.permute.xlu2 %513 }
 0x650   : > { %517 = vst.msk [vmem:[%s516_s17] sm:$0x3] %vm411_vm9, %v514_v25 }
 0x657   :  { %v541_v26 = vld [vmem:[#allocation5 + $0x2] sm:$0x3]  ;;  %v543_v27 = vld [vmem:[#allocation5 + $0x6] sm:$0x3]  ;;  %v540_v28 = vld [vmem:[#allocation5] sm:$0x3] }
 0x658   :  { %574 = vrot.lane.b32.xlu1 %v541_v26, %s835_s8  ;;  %578 = vrot.lane.b32.xlu2 %v543_v27, %s835_s8  ;;  %v542_v29 = vld [vmem:[#allocation5 + $0x4] sm:$0x3]  ;;  %v544_v30 = vld [vmem:[#allocation5 + $0x8] sm:$0x3]  ;;  %v545_v31 = vld [vmem:[#allocation5 + $0xa] sm:$0x3] }
 0x659   :  { %572 = vrot.lane.b32.xlu0 %v540_v28, %s835_s8  ;;  %v546_v32 = vld [vmem:[#allocation5 + $0xc] sm:$0x3]  ;;  %v547_v0 = vld [vmem:[#allocation5 + $0xe] sm:$0x3]  ;;  %v548_v33 = vld [vmem:[#allocation5 + $0x10] sm:$0x3] }
 0x65a   :  { %v549_v34 = vld [vmem:[#allocation5 + $0x12] sm:$0x3]  ;;  %v550_v35 = vld [vmem:[#allocation5 + $0x14] sm:$0x3]  ;;  %v551_v36 = vld [vmem:[#allocation5 + $0x16] sm:$0x3] }
 0x65b   :  { %v552_v37 = vld [vmem:[#allocation5 + $0x18] sm:$0x3]  ;;  %v553_v38 = vld [vmem:[#allocation5 + $0x1a] sm:$0x3]  ;;  %v554_v39 = vld [vmem:[#allocation5 + $0x1c] sm:$0x3] }
 0x65c   :  { %v555_v40 = vld [vmem:[#allocation5 + $0x1e] sm:$0x3] }
 0x660   :  { %576 = vrot.lane.b32.xlu1 %v542_v29, %s835_s8  ;;  %580 = vrot.lane.b32.xlu2 %v544_v30, %s835_s8 }
 0x661   :  { %582 = vrot.lane.b32.xlu0 %v545_v31, %s835_s8 }
 0x667   :  { %v520_v51 = vpop.permute.xlu0 %519 }
 0x668   :  { %584 = vrot.lane.b32.xlu1 %v546_v32, %s835_s8  ;;  %586 = vrot.lane.b32.xlu2 %v547_v0, %s835_s8  ;;  %701 = vst.msk [vmem:[%s1198_s11 + $0x2] sm:$0x3] %vm411_vm9, %v520_v51 }
 0x669   :  { %588 = vrot.lane.b32.xlu0 %v548_v33, %s835_s8 }
 0x670   :  { %590 = vrot.lane.b32.xlu1 %v549_v34, %s835_s8  ;;  %592 = vrot.lane.b32.xlu2 %v550_v35, %s835_s8 }
 0x671   :  { %594 = vrot.lane.b32.xlu0 %v551_v36, %s835_s8 }
 0x678   :  { %596 = vrot.lane.b32.xlu1 %v552_v37, %s835_s8  ;;  %598 = vrot.lane.b32.xlu2 %v553_v38, %s835_s8 }
 0x679   :  { %600 = vrot.lane.b32.xlu0 %v554_v39, %s835_s8 }
 0x680   :  { %602 = vrot.lane.b32.xlu1 %v555_v40, %s835_s8 }
 0x6b2   :  { %v579_v42 = vpop.permute.xlu2 %578 }
 0x6b3   :  { %v624_v43 = vsel %vm335_vm2, %v527_v41, %v579_v42 }
 0x6b4   :  { %641 = vst.msk [vmem:[%s1197_s10 + $0x6] sm:$0x3] %vm637_vm0, %v624_v43 }
 0x6ba   :  { %v581_v45 = vpop.permute.xlu2 %580 }
 0x6bb   :  { %v625_v46 = vsel %vm335_vm2, %v528_v44, %v581_v45 }
 0x6bc   :  { %642 = vst.msk [vmem:[%s1197_s10 + $0x8] sm:$0x3] %vm637_vm0, %v625_v46 }
 0x6c2   :  { %v587_v48 = vpop.permute.xlu2 %586 }
 0x6c3   :  { %v628_v49 = vsel %vm335_vm2, %v531_v47, %v587_v48 }
 0x6c4   :  { %645 = vst.msk [vmem:[%s1197_s10 + $0xe] sm:$0x3] %vm637_vm0, %v628_v49 }
 0x6ca   :  { %v575_v52 = vpop.permute.xlu1 %574  ;;  %v593_v55 = vpop.permute.xlu2 %592 }
 0x6cb   :  { %v622_v54 = vsel %vm335_vm2, %v525_v50, %v575_v52  ;;  %v631_v56 = vsel %vm335_vm2, %v534_v53, %v593_v55  ;;  %v573_v59 = vpop.permute.xlu0 %572 }
 0x6cc   :  { %639 = vst.msk [vmem:[%s1197_s10 + $0x2] sm:$0x3] %vm637_vm0, %v622_v54  ;;  %v621_v61 = vsel %vm335_vm2, %v524_v57, %v573_v59 }
 0x6cd   :  { %648 = vst.msk [vmem:[%s1197_s10 + $0x14] sm:$0x3] %vm637_vm0, %v631_v56 }
 0x6ce   :  { %638 = vst.msk [vmem:[%s1197_s10] sm:$0x3] %vm637_vm0, %v621_v61 }
 0x6d2   :  { %v577_v60 = vpop.permute.xlu1 %576  ;;  %v599_v1 = vpop.permute.xlu2 %598 }
 0x6d3   :  { %v623_v63 = vsel %vm335_vm2, %v526_v58, %v577_v60  ;;  %v634_v2 = vsel %vm335_vm2, %v537_v62, %v599_v1  ;;  %v583_v5 = vpop.permute.xlu0 %582 }
 0x6d4   :  { %640 = vst.msk [vmem:[%s1197_s10 + $0x4] sm:$0x3] %vm637_vm0, %v623_v63  ;;  %v626_v7 = vsel %vm335_vm2, %v529_v3, %v583_v5 }
 0x6d5   :  { %651 = vst.msk [vmem:[%s1197_s10 + $0x1a] sm:$0x3] %vm637_vm0, %v634_v2 }
 0x6d6   :  { %643 = vst.msk [vmem:[%s1197_s10 + $0xa] sm:$0x3] %vm637_vm0, %v626_v7 }
 0x6da   :  { %v585_v6 = vpop.permute.xlu1 %584 }
 0x6db   :  { %v627_v8 = vsel %vm335_vm2, %v530_v4, %v585_v6  ;;  %v589_v11 = vpop.permute.xlu0 %588 }
 0x6dc   :  { %644 = vst.msk [vmem:[%s1197_s10 + $0xc] sm:$0x3] %vm637_vm0, %v627_v8  ;;  %v629_v13 = vsel %vm335_vm2, %v532_v9, %v589_v11 }
 0x6dd   :  { %646 = vst.msk [vmem:[%s1197_s10 + $0x10] sm:$0x3] %vm637_vm0, %v629_v13 }
 0x6e2   :  { %v591_v12 = vpop.permute.xlu1 %590 }
 0x6e3   :  { %v630_v14 = vsel %vm335_vm2, %v533_v10, %v591_v12  ;;  %v595_v17 = vpop.permute.xlu0 %594 }
 0x6e4   :  { %647 = vst.msk [vmem:[%s1197_s10 + $0x12] sm:$0x3] %vm637_vm0, %v630_v14  ;;  %v632_v19 = vsel %vm335_vm2, %v535_v15, %v595_v17 }
 0x6e5   :  { %649 = vst.msk [vmem:[%s1197_s10 + $0x16] sm:$0x3] %vm637_vm0, %v632_v19 }
 0x6ea   :  { %v597_v18 = vpop.permute.xlu1 %596 }
 0x6eb   :  { %v633_v20 = vsel %vm335_vm2, %v536_v16, %v597_v18  ;;  %v601_v23 = vpop.permute.xlu0 %600 }
 0x6ec   :  { %650 = vst.msk [vmem:[%s1197_s10 + $0x18] sm:$0x3] %vm637_vm0, %v633_v20  ;;  %v635_v25 = vsel %vm335_vm2, %v538_v21, %v601_v23 }
 0x6ed   :  { %652 = vst.msk [vmem:[%s1197_s10 + $0x1c] sm:$0x3] %vm637_vm0, %v635_v25 }
 0x6f2   :  { %v603_v24 = vpop.permute.xlu1 %602 }
 0x6f3   :  { %v636_v26 = vsel %vm335_vm2, %v539_v22, %v603_v24 }
 0x6f4   :  { %653 = vst.msk [vmem:[%s1197_s10 + $0x1e] sm:$0x3] %vm637_vm0, %v636_v26 }
 0x6f5   :  { %662 = vsyncpa [#allocation7], 1 }

</bundles_post_ra>
